<compile_context>
chip_gen: v7x
topology: tpu7x:2x2x1
jax: 0.10.0
libtpu: 0.0.40
codegen_flags: <defaults>
</compile_context>

<pallas_src>
import functools
import math

import jax
import jax.numpy as jnp
from jax.experimental import pallas as pl
from jax.experimental.pallas import tpu as pltpu


# ---------------------------------------------------------------------------
# Fused Pallas kernel
# ---------------------------------------------------------------------------

def _fused_controller_kernel(
    pr_ref, kx_ref, vx_ref, kc_ref, vc_ref, h_in_ref, c_in_ref,
    wq_x_ref, bq_x_ref, wk_x_ref, bk_x_ref, wv_x_ref, bv_x_ref,
    wq_c_ref, bq_c_ref, wk_c_ref, bk_c_ref, wv_c_ref, bv_c_ref,
    seg_sum_x_ref, seg_exp_x_ref, seg_sum_c_ref, seg_exp_c_ref,
    w_pr_ref, w_ax_ref, w_ac_ref, w_hh0_ref, b0_ref,
    w_ih_r_ref, w_hh_r_ref, b_r_ref,
    out_ref, *, hidden, num_layers):
    f32 = jnp.float32
    H = hidden
    N, S, E = kx_ref.shape
    Sc = kc_ref.shape[1]

    pr = pr_ref[...]                              # (N, E)
    kx = kx_ref[...].reshape(N * S, E)            # flatten batch*seq for projections
    vx = vx_ref[...].reshape(N * S, E)
    kc = kc_ref[...].reshape(N * Sc, E)
    vc = vc_ref[...].reshape(N * Sc, E)

    def grouped_attention(q, k3, v3, seg_sum, seg_exp):
        # q: (n, G*D) already scaled; k3/v3: (n, s, G*D); softmax per head group.
        n, s, gd = k3.shape
        g = seg_sum.shape[1]
        prod = (q[:, None, :] * k3).reshape(n * s, gd)                     # VPU
        scores = jnp.dot(prod, seg_sum,
                         preferred_element_type=f32).reshape(n, s, g)     # per-head sum
        scores = scores - jnp.max(scores, axis=1, keepdims=True)
        p = jnp.exp(scores)
        p = p / jnp.sum(p, axis=1, keepdims=True)
        p_exp = jnp.dot(p.reshape(n * s, g), seg_exp,
                        preferred_element_type=f32).reshape(n, s, gd)      # lane expand
        return jnp.sum(p_exp * v3, axis=1)                                 # (n, G*D)

    # ---- x_attn (2 heads) + x_attn_2 (2 heads): fused projections, 4 head groups
    q_x = jnp.dot(pr, wq_x_ref[...], preferred_element_type=f32) + bq_x_ref[...]
    k_x3 = (jnp.dot(kx, wk_x_ref[...], preferred_element_type=f32)
            + bk_x_ref[...]).reshape(N, S, 2 * E)
    v_x3 = (jnp.dot(vx, wv_x_ref[...], preferred_element_type=f32)
            + bv_x_ref[...]).reshape(N, S, 2 * E)
    ctx_x = grouped_attention(q_x, k_x3, v_x3,
                              seg_sum_x_ref[...], seg_exp_x_ref[...])      # (N, 2E)

    # ---- ctrl_attn: single head of width E
    q_c = jnp.dot(pr, wq_c_ref[...], preferred_element_type=f32) + bq_c_ref[...]
    k_c3 = (jnp.dot(kc, wk_c_ref[...], preferred_element_type=f32)
            + bk_c_ref[...]).reshape(N, Sc, E)
    v_c3 = (jnp.dot(vc, wv_c_ref[...], preferred_element_type=f32)
            + bv_c_ref[...]).reshape(N, Sc, E)
    ctx_c = grouped_attention(q_c, k_c3, v_c3,
                              seg_sum_c_ref[...], seg_exp_c_ref[...])      # (N, E)

    # ---- LSTM cells (gate order i, f, g, o)
    def cell(gates, c_prev):
        i = jax.nn.sigmoid(gates[:, 0:H])
        f = jax.nn.sigmoid(gates[:, H:2 * H])
        g = jnp.tanh(gates[:, 2 * H:3 * H])
        o = jax.nn.sigmoid(gates[:, 3 * H:4 * H])
        c_new = f * c_prev + i * g
        h_new = o * jnp.tanh(c_new)
        return h_new, c_new

    # layer 0: x = [prev_reads | a1 | a2 | a3]; out-projections are pre-folded
    # into w_ax / w_ac / b0 so the a_i never materialize.
    gates0 = (jnp.dot(pr, w_pr_ref[...], preferred_element_type=f32)
              + jnp.dot(ctx_x, w_ax_ref[...], preferred_element_type=f32)
              + jnp.dot(ctx_c, w_ac_ref[...], preferred_element_type=f32)
              + jnp.dot(h_in_ref[0], w_hh0_ref[...], preferred_element_type=f32)
              + b0_ref[...])                                               # (N, 4H)
    h_new, c_new = cell(gates0, c_in_ref[0])
    slabs = [h_new, c_new]
    x_l = h_new
    for l in range(1, num_layers):                # static layer loop
        gates = (jnp.dot(x_l, w_ih_r_ref[l - 1], preferred_element_type=f32)
                 + jnp.dot(h_in_ref[l], w_hh_r_ref[l - 1], preferred_element_type=f32)
                 + b_r_ref[l - 1])
        h_new, c_new = cell(gates, c_in_ref[l])
        slabs.extend([h_new, c_new])
        x_l = h_new

    # single lane-dense store: [h_0 | c_0 | h_1 | c_1 | ...] → (N, num_layers*2*H)
    out_ref[...] = jnp.concatenate(slabs, axis=-1)


# ---------------------------------------------------------------------------
# Wrapper: weight packing (transpose / fuse heads / fold out-proj) + pallas_call
# ---------------------------------------------------------------------------

def lstm_controller_forward(params, prev_reads, k_x, v_x, k_ctrl, v_ctrl, prev_state):
    """Mirrors LSTMController.forward; single fused Pallas kernel."""
    f32 = jnp.float32
    N, E = prev_reads.shape
    H = params["lstm"][0]["w_hh"].shape[1]
    L = len(params["lstm"])
    Dx = E // 2                                  # head dim of the 2-head attentions

    # batch-major activations for the kernel
    kx = jnp.transpose(k_x, (1, 0, 2))           # (N, S, E)
    vx = jnp.transpose(v_x, (1, 0, 2))
    kc = jnp.transpose(k_ctrl, (1, 0, 2))        # (N, S_ctrl, E)
    vc = jnp.transpose(v_ctrl, (1, 0, 2))

    def qkv(p):
        wq, wk, wv = jnp.split(p["in_proj_w"], 3, axis=0)     # each (E, E)
        bq, bk, bv = jnp.split(p["in_proj_b"], 3, axis=0)     # each (E,)
        return wq.T, bq, wk.T, bk, wv.T, bv

    wq1, bq1, wk1, bk1, wv1, bv1 = qkv(params["x_attn"])
    wq2, bq2, wk2, bk2, wv2, bv2 = qkv(params["x_attn_2"])
    wqc, bqc, wkc, bkc, wvc, bvc = qkv(params["ctrl_attn"])

    sx = 1.0 / math.sqrt(Dx)                     # attention scale folded into q
    sc = 1.0 / math.sqrt(E)
    wq_x = jnp.concatenate([wq1, wq2], axis=1) * sx                 # (E, 2E)
    bq_x = (jnp.concatenate([bq1, bq2]) * sx).reshape(1, 2 * E)
    wk_x = jnp.concatenate([wk1, wk2], axis=1)                      # (E, 2E)
    bk_x = jnp.concatenate([bk1, bk2]).reshape(1, 2 * E)
    wv_x = jnp.concatenate([wv1, wv2], axis=1)
    bv_x = jnp.concatenate([bv1, bv2]).reshape(1, 2 * E)
    wq_c = wqc * sc
    bq_c = (bqc * sc).reshape(1, E)
    wk_c, bk_c = wkc, bkc.reshape(1, E)
    wv_c, bv_c = wvc, bvc.reshape(1, E)

    # segment matrices: per-head score sum and per-head prob expansion
    seg_sum_x = jnp.kron(jnp.eye(4, dtype=f32), jnp.ones((Dx, 1), f32))   # (2E, 4)
    seg_exp_x = seg_sum_x.T                                               # (4, 2E)
    seg_sum_c = jnp.ones((E, 1), f32)
    seg_exp_c = jnp.ones((1, E), f32)

    # LSTM layer 0: transposed input weight split into segments; fold attention
    # output projections (and biases) directly into the a1/a2/a3 segments.
    lp0 = params["lstm"][0]
    w_ih0 = lp0["w_ih"].T                                     # (4E, 4H)
    w_hh0 = lp0["w_hh"].T                                     # (H, 4H)
    W_pr, W_a1, W_a2, W_a3 = (w_ih0[0:E], w_ih0[E:2 * E],
                              w_ih0[2 * E:3 * E], w_ih0[3 * E:4 * E])
    wo1 = params["x_attn"]["out_proj_w"]
    wo2 = params["x_attn_2"]["out_proj_w"]
    woc = params["ctrl_attn"]["out_proj_w"]
    bo1 = params["x_attn"]["out_proj_b"]
    bo2 = params["x_attn_2"]["out_proj_b"]
    boc = params["ctrl_attn"]["out_proj_b"]

    def fold(wo, W_seg):     # per-head out-proj folded into the layer-0 segment
        return jnp.concatenate(
            [wo[:, h * Dx:(h + 1) * Dx].T @ W_seg for h in range(2)], axis=0)

    w_ax = jnp.concatenate([fold(wo1, W_a1), fold(wo2, W_a2)], axis=0)    # (2E, 4H)
    w_ac = woc.T @ W_a3                                                   # (E, 4H)
    b0 = (lp0["b_ih"] + lp0["b_hh"]
          + bo1 @ W_a1 + bo2 @ W_a2 + boc @ W_a3).reshape(1, 4 * H)

    if L > 1:
        w_ih_r = jnp.stack([params["lstm"][l]["w_ih"].T for l in range(1, L)])
        w_hh_r = jnp.stack([params["lstm"][l]["w_hh"].T for l in range(1, L)])
        b_r = jnp.stack([(params["lstm"][l]["b_ih"]
                          + params["lstm"][l]["b_hh"]).reshape(1, 4 * H)
                         for l in range(1, L)])
    else:   # dummies (never read when L == 1)
        w_ih_r = jnp.zeros((1, H, 4 * H), f32)
        w_hh_r = jnp.zeros((1, H, 4 * H), f32)
        b_r = jnp.zeros((1, 1, 4 * H), f32)

    h_prev, c_prev = prev_state

    kernel = functools.partial(_fused_controller_kernel, hidden=H, num_layers=L)
    vmem = pl.BlockSpec(memory_space=pltpu.MemorySpace.VMEM)
    args = (prev_reads, kx, vx, kc, vc, h_prev, c_prev,
            wq_x, bq_x, wk_x, bk_x, wv_x, bv_x,
            wq_c, bq_c, wk_c, bk_c, wv_c, bv_c,
            seg_sum_x, seg_exp_x, seg_sum_c, seg_exp_c,
            W_pr, w_ax, w_ac, w_hh0, b0,
            w_ih_r, w_hh_r, b_r)

    out = pl.pallas_call(
        kernel,
        out_shape=jax.ShapeDtypeStruct((N, L * 2 * H), f32),
        in_specs=[vmem] * len(args),
        out_specs=vmem,
    )(*args)

    hs = [out[:, l * 2 * H: l * 2 * H + H] for l in range(L)]
    cs = [out[:, l * 2 * H + H: (l + 1) * 2 * H] for l in range(L)]
    return hs[-1], (jnp.stack(hs, axis=0), jnp.stack(cs, axis=0))


# ---------------------------------------------------------------------------
# Deterministic parameter init (shapes as in the PyTorch __init__)
# ---------------------------------------------------------------------------

def init_params(key, num_inputs, num_outputs, num_layers):
    E = num_inputs // 3
    H = num_outputs
    keys = jax.random.split(key, 8 + num_layers)

    def mha_params(k):
        k1, k2 = jax.random.split(k)
        bound_in = math.sqrt(6.0 / (E + 3 * E))
        bound_out = 1.0 / math.sqrt(E)
        return dict(
            in_proj_w=jax.random.uniform(k1, (3 * E, E), jnp.float32, -bound_in, bound_in),
            in_proj_b=jnp.zeros((3 * E,), jnp.float32),
            out_proj_w=jax.random.uniform(k2, (E, E), jnp.float32, -bound_out, bound_out),
            out_proj_b=jnp.zeros((E,), jnp.float32),
        )

    stdev = 5.0 / math.sqrt(num_inputs + num_outputs)   # matches reset_parameters()
    lstm_layers = []
    for l in range(num_layers):
        in_size = (num_inputs // 3) * 4 if l == 0 else H
        k1, k2 = jax.random.split(keys[5 + l])
        lstm_layers.append(dict(
            w_ih=jax.random.uniform(k1, (4 * H, in_size), jnp.float32, -stdev, stdev),
            w_hh=jax.random.uniform(k2, (4 * H, H), jnp.float32, -stdev, stdev),
            b_ih=jnp.zeros((4 * H,), jnp.float32),
            b_hh=jnp.zeros((4 * H,), jnp.float32),
        ))

    return dict(
        x_attn=mha_params(keys[0]),
        x_attn_2=mha_params(keys[1]),
        ctrl_attn=mha_params(keys[2]),
        lstm=lstm_layers,
        lstm_h_bias=0.05 * jax.random.normal(keys[3], (num_layers, 1, H), jnp.float32),
        lstm_c_bias=0.05 * jax.random.normal(keys[4], (num_layers, 1, H), jnp.float32),
    )


def create_new_state(params, batch_size):
    h = jnp.tile(params["lstm_h_bias"], (1, batch_size, 1))
    c = jnp.tile(params["lstm_c_bias"], (1, batch_size, 1))
    return (h, c)


# ---------------------------------------------------------------------------
# Pure-JAX reference (for correctness check)
# ---------------------------------------------------------------------------

def _mha_ref(query, key, value, p, num_heads):
    N, E = query.shape
    S = key.shape[0]
    D = E // num_heads
    wq, wk, wv = jnp.split(p["in_proj_w"], 3, axis=0)
    bq, bk, bv = jnp.split(p["in_proj_b"], 3, axis=0)
    q = query @ wq.T + bq
    k = jnp.einsum("sne,fe->nsf", key, wk) + bk
    v = jnp.einsum("sne,fe->nsf", value, wv) + bv
    q = q.reshape(N, num_heads, D)
    k = k.reshape(N, S, num_heads, D)
    v = v.reshape(N, S, num_heads, D)
    scores = jnp.einsum("nhd,nshd->nhs", q, k) / math.sqrt(D)
    w = jax.nn.softmax(scores, axis=-1)
    attn = jnp.einsum("nhs,nshd->nhd", w, v).reshape(N, E)
    return attn @ p["out_proj_w"].T + p["out_proj_b"]


def _lstm_cell_ref(x, h, c, lp):
    H = h.shape[-1]
    gates = x @ lp["w_ih"].T + h @ lp["w_hh"].T + lp["b_ih"] + lp["b_hh"]
    i = jax.nn.sigmoid(gates[:, 0:H])
    f = jax.nn.sigmoid(gates[:, H:2 * H])
    g = jnp.tanh(gates[:, 2 * H:3 * H])
    o = jax.nn.sigmoid(gates[:, 3 * H:4 * H])
    c_new = f * c + i * g
    return o * jnp.tanh(c_new), c_new


def _forward_ref(params, prev_reads, k_x, v_x, k_ctrl, v_ctrl, prev_state):
    a1 = _mha_ref(prev_reads, k_x, v_x, params["x_attn"], 2)
    a2 = _mha_ref(prev_reads, k_x, v_x, params["x_attn_2"], 2)
    a3 = _mha_ref(prev_reads, k_ctrl, v_ctrl, params["ctrl_attn"], 1)
    x = jnp.concatenate([prev_reads, a1, a2, a3], axis=-1)
    h_prev, c_prev = prev_state
    hs, cs = [], []
    inp = x
    for l, lp in enumerate(params["lstm"]):
        h_new, c_new = _lstm_cell_ref(inp, h_prev[l], c_prev[l], lp)
        hs.append(h_new)
        cs.append(c_new)
        inp = h_new
    return inp, (jnp.stack(hs), jnp.stack(cs))


# ---------------------------------------------------------------------------
# Main
# ---------------------------------------------------------------------------

if __name__ == "__main__":
    num_inputs = 48          # E = num_inputs // 3 = 16 (divisible by 2 heads)
    num_outputs = 32         # H
    num_layers = 2
    N = 2                    # batch
    S = 8                    # k_x / v_x sequence length
    S_CTRL = 6               # k_ctrl / v_ctrl sequence length
    E = num_inputs // 3

    key = jax.random.PRNGKey(0)
    kp, k1, k2, k3, k4, k5 = jax.random.split(key, 6)

    params = init_params(kp, num_inputs, num_outputs, num_layers)

    prev_reads = jax.random.normal(k1, (N, E), jnp.float32)
    k_x = jax.random.normal(k2, (S, N, E), jnp.float32)
    v_x = jax.random.normal(k3, (S, N, E), jnp.float32)
    k_ctrl = jax.random.normal(k4, (S_CTRL, N, E), jnp.float32)
    v_ctrl = jax.random.normal(k5, (S_CTRL, N, E), jnp.float32)
    prev_state = create_new_state(params, N)

    fwd = jax.jit(lstm_controller_forward)
    outp, (h_state, c_state) = fwd(
        params, prev_reads, k_x, v_x, k_ctrl, v_ctrl, prev_state)
    jax.block_until_ready((outp, h_state, c_state))

    # correctness check vs. pure-JAX reference
    outp_ref, (h_ref, c_ref) = _forward_ref(
        params, prev_reads, k_x, v_x, k_ctrl, v_ctrl, prev_state)
    assert outp.shape == (N, num_outputs)
    assert h_state.shape == (num_layers, N, num_outputs)
    assert c_state.shape == (num_layers, N, num_outputs)
    assert jnp.allclose(outp, outp_ref, rtol=1e-4, atol=1e-4)
    assert jnp.allclose(h_state, h_ref, rtol=1e-4, atol=1e-4)
    assert jnp.allclose(c_state, c_ref, rtol=1e-4, atol=1e-4)

    print("KERNEL_OK")
</pallas_src>

<mosaic_0001>
module attributes {stable_mosaic.version = 11 : i64} {
  func.func @_fused_controller_kernel(%arg0: memref<2x16xf32, #tpu.memory_space<vmem>>, %arg1: memref<2x8x16xf32, #tpu.memory_space<vmem>>, %arg2: memref<2x8x16xf32, #tpu.memory_space<vmem>>, %arg3: memref<2x6x16xf32, #tpu.memory_space<vmem>>, %arg4: memref<2x6x16xf32, #tpu.memory_space<vmem>>, %arg5: memref<2x2x32xf32, #tpu.memory_space<vmem>>, %arg6: memref<2x2x32xf32, #tpu.memory_space<vmem>>, %arg7: memref<16x32xf32, #tpu.memory_space<vmem>>, %arg8: memref<1x32xf32, #tpu.memory_space<vmem>>, %arg9: memref<16x32xf32, #tpu.memory_space<vmem>>, %arg10: memref<1x32xf32, #tpu.memory_space<vmem>>, %arg11: memref<16x32xf32, #tpu.memory_space<vmem>>, %arg12: memref<1x32xf32, #tpu.memory_space<vmem>>, %arg13: memref<16x16xf32, #tpu.memory_space<vmem>>, %arg14: memref<1x16xf32, #tpu.memory_space<vmem>>, %arg15: memref<16x16xf32, #tpu.memory_space<vmem>>, %arg16: memref<1x16xf32, #tpu.memory_space<vmem>>, %arg17: memref<16x16xf32, #tpu.memory_space<vmem>>, %arg18: memref<1x16xf32, #tpu.memory_space<vmem>>, %arg19: memref<32x4xf32, #tpu.memory_space<vmem>>, %arg20: memref<4x32xf32, #tpu.memory_space<vmem>>, %arg21: memref<16x1xf32, #tpu.memory_space<vmem>>, %arg22: memref<1x16xf32, #tpu.memory_space<vmem>>, %arg23: memref<16x128xf32, #tpu.memory_space<vmem>>, %arg24: memref<32x128xf32, #tpu.memory_space<vmem>>, %arg25: memref<16x128xf32, #tpu.memory_space<vmem>>, %arg26: memref<32x128xf32, #tpu.memory_space<vmem>>, %arg27: memref<1x128xf32, #tpu.memory_space<vmem>>, %arg28: memref<1x32x128xf32, #tpu.memory_space<vmem>>, %arg29: memref<1x32x128xf32, #tpu.memory_space<vmem>>, %arg30: memref<1x1x128xf32, #tpu.memory_space<vmem>>, %arg31: memref<2x128xf32, #tpu.memory_space<vmem>>) attributes {dimension_semantics = [], scalar_prefetch = 0 : i64, scratch_operands = 0 : i64, tpu.core_type = #tpu.core_type<tc>} {
    %c0 = arith.constant 0 : index
    %c0_0 = arith.constant 0 : index
    %0 = vector.load %arg0[%c0, %c0_0] : memref<2x16xf32, #tpu.memory_space<vmem>>, vector<2x16xf32>
    %c0_1 = arith.constant 0 : index
    %c0_2 = arith.constant 0 : index
    %c0_3 = arith.constant 0 : index
    %1 = vector.load %arg1[%c0_1, %c0_2, %c0_3] : memref<2x8x16xf32, #tpu.memory_space<vmem>>, vector<2x8x16xf32>
    %2 = vector.shape_cast %1 : vector<2x8x16xf32> to vector<16x16xf32>
    %c0_4 = arith.constant 0 : index
    %c0_5 = arith.constant 0 : index
    %c0_6 = arith.constant 0 : index
    %3 = vector.load %arg2[%c0_4, %c0_5, %c0_6] : memref<2x8x16xf32, #tpu.memory_space<vmem>>, vector<2x8x16xf32>
    %4 = vector.shape_cast %3 : vector<2x8x16xf32> to vector<16x16xf32>
    %c0_7 = arith.constant 0 : index
    %c0_8 = arith.constant 0 : index
    %c0_9 = arith.constant 0 : index
    %5 = vector.load %arg3[%c0_7, %c0_8, %c0_9] : memref<2x6x16xf32, #tpu.memory_space<vmem>>, vector<2x6x16xf32>
    %6 = vector.shape_cast %5 : vector<2x6x16xf32> to vector<12x16xf32>
    %c0_10 = arith.constant 0 : index
    %c0_11 = arith.constant 0 : index
    %c0_12 = arith.constant 0 : index
    %7 = vector.load %arg4[%c0_10, %c0_11, %c0_12] : memref<2x6x16xf32, #tpu.memory_space<vmem>>, vector<2x6x16xf32>
    %8 = vector.shape_cast %7 : vector<2x6x16xf32> to vector<12x16xf32>
    %c0_13 = arith.constant 0 : index
    %c0_14 = arith.constant 0 : index
    %9 = vector.load %arg7[%c0_13, %c0_14] : memref<16x32xf32, #tpu.memory_space<vmem>>, vector<16x32xf32>
    %cst = arith.constant dense<0.000000e+00> : vector<2x32xf32>
    %10 = tpu.matmul %0, %9, %cst {dimension_numbers = #tpu.dot_dimension_numbers<[1], [0], [0], [1], [0, 0, 1, 1], [], []>} : vector<2x16xf32>, vector<16x32xf32>, vector<2x32xf32> -> vector<2x32xf32>
    %c0_15 = arith.constant 0 : index
    %c0_16 = arith.constant 0 : index
    %11 = vector.load %arg8[%c0_15, %c0_16] : memref<1x32xf32, #tpu.memory_space<vmem>>, vector<1x32xf32>
    %12 = vector.broadcast %11 : vector<1x32xf32> to vector<2x32xf32>
    %13 = arith.addf %10, %12 : vector<2x32xf32>
    %c0_17 = arith.constant 0 : index
    %c0_18 = arith.constant 0 : index
    %14 = vector.load %arg9[%c0_17, %c0_18] : memref<16x32xf32, #tpu.memory_space<vmem>>, vector<16x32xf32>
    %cst_19 = arith.constant dense<0.000000e+00> : vector<16x32xf32>
    %15 = tpu.matmul %2, %14, %cst_19 {dimension_numbers = #tpu.dot_dimension_numbers<[1], [0], [0], [1], [0, 0, 1, 1], [], []>} : vector<16x16xf32>, vector<16x32xf32>, vector<16x32xf32> -> vector<16x32xf32>
    %c0_20 = arith.constant 0 : index
    %c0_21 = arith.constant 0 : index
    %16 = vector.load %arg10[%c0_20, %c0_21] : memref<1x32xf32, #tpu.memory_space<vmem>>, vector<1x32xf32>
    %17 = vector.broadcast %16 : vector<1x32xf32> to vector<16x32xf32>
    %18 = arith.addf %15, %17 : vector<16x32xf32>
    %19 = vector.shape_cast %18 : vector<16x32xf32> to vector<2x8x32xf32>
    %c0_22 = arith.constant 0 : index
    %c0_23 = arith.constant 0 : index
    %20 = vector.load %arg11[%c0_22, %c0_23] : memref<16x32xf32, #tpu.memory_space<vmem>>, vector<16x32xf32>
    %cst_24 = arith.constant dense<0.000000e+00> : vector<16x32xf32>
    %21 = tpu.matmul %4, %20, %cst_24 {dimension_numbers = #tpu.dot_dimension_numbers<[1], [0], [0], [1], [0, 0, 1, 1], [], []>} : vector<16x16xf32>, vector<16x32xf32>, vector<16x32xf32> -> vector<16x32xf32>
    %c0_25 = arith.constant 0 : index
    %c0_26 = arith.constant 0 : index
    %22 = vector.load %arg12[%c0_25, %c0_26] : memref<1x32xf32, #tpu.memory_space<vmem>>, vector<1x32xf32>
    %23 = vector.broadcast %22 : vector<1x32xf32> to vector<16x32xf32>
    %24 = arith.addf %21, %23 : vector<16x32xf32>
    %25 = vector.shape_cast %24 : vector<16x32xf32> to vector<2x8x32xf32>
    %c0_27 = arith.constant 0 : index
    %c0_28 = arith.constant 0 : index
    %26 = vector.load %arg19[%c0_27, %c0_28] : memref<32x4xf32, #tpu.memory_space<vmem>>, vector<32x4xf32>
    %c0_29 = arith.constant 0 : index
    %c0_30 = arith.constant 0 : index
    %27 = vector.load %arg20[%c0_29, %c0_30] : memref<4x32xf32, #tpu.memory_space<vmem>>, vector<4x32xf32>
    %28 = vector.shape_cast %13 : vector<2x32xf32> to vector<2x1x32xf32>
    %29 = vector.broadcast %28 : vector<2x1x32xf32> to vector<2x8x32xf32>
    %30 = arith.mulf %29, %19 : vector<2x8x32xf32>
    %31 = vector.shape_cast %30 : vector<2x8x32xf32> to vector<16x32xf32>
    %cst_31 = arith.constant dense<0.000000e+00> : vector<16x4xf32>
    %32 = tpu.matmul %31, %26, %cst_31 {dimension_numbers = #tpu.dot_dimension_numbers<[1], [0], [0], [1], [0, 0, 1, 1], [], []>} : vector<16x32xf32>, vector<32x4xf32>, vector<16x4xf32> -> vector<16x4xf32>
    %33 = vector.shape_cast %32 : vector<16x4xf32> to vector<2x8x4xf32>
    %cst_32 = arith.constant dense<0xFF800000> : vector<2x4xf32>
    %34 = vector.multi_reduction <maximumf>, %33, %cst_32 [1] : vector<2x8x4xf32> to vector<2x4xf32>
    %35 = vector.shape_cast %34 : vector<2x4xf32> to vector<2x1x4xf32>
    %36 = vector.broadcast %35 : vector<2x1x4xf32> to vector<2x8x4xf32>
    %37 = arith.subf %33, %36 : vector<2x8x4xf32>
    %38 = math.exp %37 : vector<2x8x4xf32>
    %cst_33 = arith.constant dense<0.000000e+00> : vector<2x4xf32>
    %39 = vector.multi_reduction <add>, %38, %cst_33 [1] : vector<2x8x4xf32> to vector<2x4xf32>
    %40 = vector.shape_cast %39 : vector<2x4xf32> to vector<2x1x4xf32>
    %41 = vector.broadcast %40 : vector<2x1x4xf32> to vector<2x8x4xf32>
    %42 = arith.divf %38, %41 : vector<2x8x4xf32>
    %43 = vector.shape_cast %42 : vector<2x8x4xf32> to vector<16x4xf32>
    %cst_34 = arith.constant dense<0.000000e+00> : vector<16x32xf32>
    %44 = tpu.matmul %43, %27, %cst_34 {dimension_numbers = #tpu.dot_dimension_numbers<[1], [0], [0], [1], [0, 0, 1, 1], [], []>} : vector<16x4xf32>, vector<4x32xf32>, vector<16x32xf32> -> vector<16x32xf32>
    %45 = vector.shape_cast %44 : vector<16x32xf32> to vector<2x8x32xf32>
    %46 = arith.mulf %45, %25 : vector<2x8x32xf32>
    %cst_35 = arith.constant dense<0.000000e+00> : vector<2x32xf32>
    %47 = vector.multi_reduction <add>, %46, %cst_35 [1] : vector<2x8x32xf32> to vector<2x32xf32>
    %c0_36 = arith.constant 0 : index
    %c0_37 = arith.constant 0 : index
    %48 = vector.load %arg13[%c0_36, %c0_37] : memref<16x16xf32, #tpu.memory_space<vmem>>, vector<16x16xf32>
    %cst_38 = arith.constant dense<0.000000e+00> : vector<2x16xf32>
    %49 = tpu.matmul %0, %48, %cst_38 {dimension_numbers = #tpu.dot_dimension_numbers<[1], [0], [0], [1], [0, 0, 1, 1], [], []>} : vector<2x16xf32>, vector<16x16xf32>, vector<2x16xf32> -> vector<2x16xf32>
    %c0_39 = arith.constant 0 : index
    %c0_40 = arith.constant 0 : index
    %50 = vector.load %arg14[%c0_39, %c0_40] : memref<1x16xf32, #tpu.memory_space<vmem>>, vector<1x16xf32>
    %51 = vector.broadcast %50 : vector<1x16xf32> to vector<2x16xf32>
    %52 = arith.addf %49, %51 : vector<2x16xf32>
    %c0_41 = arith.constant 0 : index
    %c0_42 = arith.constant 0 : index
    %53 = vector.load %arg15[%c0_41, %c0_42] : memref<16x16xf32, #tpu.memory_space<vmem>>, vector<16x16xf32>
    %cst_43 = arith.constant dense<0.000000e+00> : vector<12x16xf32>
    %54 = tpu.matmul %6, %53, %cst_43 {dimension_numbers = #tpu.dot_dimension_numbers<[1], [0], [0], [1], [0, 0, 1, 1], [], []>} : vector<12x16xf32>, vector<16x16xf32>, vector<12x16xf32> -> vector<12x16xf32>
    %c0_44 = arith.constant 0 : index
    %c0_45 = arith.constant 0 : index
    %55 = vector.load %arg16[%c0_44, %c0_45] : memref<1x16xf32, #tpu.memory_space<vmem>>, vector<1x16xf32>
    %56 = vector.broadcast %55 : vector<1x16xf32> to vector<12x16xf32>
    %57 = arith.addf %54, %56 : vector<12x16xf32>
    %58 = vector.shape_cast %57 : vector<12x16xf32> to vector<2x6x16xf32>
    %c0_46 = arith.constant 0 : index
    %c0_47 = arith.constant 0 : index
    %59 = vector.load %arg17[%c0_46, %c0_47] : memref<16x16xf32, #tpu.memory_space<vmem>>, vector<16x16xf32>
    %cst_48 = arith.constant dense<0.000000e+00> : vector<12x16xf32>
    %60 = tpu.matmul %8, %59, %cst_48 {dimension_numbers = #tpu.dot_dimension_numbers<[1], [0], [0], [1], [0, 0, 1, 1], [], []>} : vector<12x16xf32>, vector<16x16xf32>, vector<12x16xf32> -> vector<12x16xf32>
    %c0_49 = arith.constant 0 : index
    %c0_50 = arith.constant 0 : index
    %61 = vector.load %arg18[%c0_49, %c0_50] : memref<1x16xf32, #tpu.memory_space<vmem>>, vector<1x16xf32>
    %62 = vector.broadcast %61 : vector<1x16xf32> to vector<12x16xf32>
    %63 = arith.addf %60, %62 : vector<12x16xf32>
    %64 = vector.shape_cast %63 : vector<12x16xf32> to vector<2x6x16xf32>
    %c0_51 = arith.constant 0 : index
    %c0_52 = arith.constant 0 : index
    %65 = vector.load %arg21[%c0_51, %c0_52] : memref<16x1xf32, #tpu.memory_space<vmem>>, vector<16x1xf32>
    %c0_53 = arith.constant 0 : index
    %c0_54 = arith.constant 0 : index
    %66 = vector.load %arg22[%c0_53, %c0_54] : memref<1x16xf32, #tpu.memory_space<vmem>>, vector<1x16xf32>
    %67 = vector.shape_cast %52 : vector<2x16xf32> to vector<2x1x16xf32>
    %68 = vector.broadcast %67 : vector<2x1x16xf32> to vector<2x6x16xf32>
    %69 = arith.mulf %68, %58 : vector<2x6x16xf32>
    %70 = vector.shape_cast %69 : vector<2x6x16xf32> to vector<12x16xf32>
    %cst_55 = arith.constant dense<0.000000e+00> : vector<12x1xf32>
    %71 = tpu.matmul %70, %65, %cst_55 {dimension_numbers = #tpu.dot_dimension_numbers<[1], [0], [0], [1], [0, 0, 1, 1], [], []>} : vector<12x16xf32>, vector<16x1xf32>, vector<12x1xf32> -> vector<12x1xf32>
    %72 = vector.shape_cast %71 : vector<12x1xf32> to vector<2x6x1xf32>
    %cst_56 = arith.constant dense<0xFF800000> : vector<2x1xf32>
    %73 = vector.multi_reduction <maximumf>, %72, %cst_56 [1] : vector<2x6x1xf32> to vector<2x1xf32>
    %74 = vector.shape_cast %73 : vector<2x1xf32> to vector<2x1x1xf32>
    %75 = vector.broadcast %74 : vector<2x1x1xf32> to vector<2x6x1xf32>
    %76 = arith.subf %72, %75 : vector<2x6x1xf32>
    %77 = math.exp %76 : vector<2x6x1xf32>
    %cst_57 = arith.constant dense<0.000000e+00> : vector<2x1xf32>
    %78 = vector.multi_reduction <add>, %77, %cst_57 [1] : vector<2x6x1xf32> to vector<2x1xf32>
    %79 = vector.shape_cast %78 : vector<2x1xf32> to vector<2x1x1xf32>
    %80 = vector.broadcast %79 : vector<2x1x1xf32> to vector<2x6x1xf32>
    %81 = arith.divf %77, %80 : vector<2x6x1xf32>
    %82 = vector.shape_cast %81 : vector<2x6x1xf32> to vector<12x1xf32>
    %cst_58 = arith.constant dense<0.000000e+00> : vector<12x16xf32>
    %83 = tpu.matmul %82, %66, %cst_58 {dimension_numbers = #tpu.dot_dimension_numbers<[1], [0], [0], [1], [0, 0, 1, 1], [], []>} : vector<12x1xf32>, vector<1x16xf32>, vector<12x16xf32> -> vector<12x16xf32>
    %84 = vector.shape_cast %83 : vector<12x16xf32> to vector<2x6x16xf32>
    %85 = arith.mulf %84, %64 : vector<2x6x16xf32>
    %cst_59 = arith.constant dense<0.000000e+00> : vector<2x16xf32>
    %86 = vector.multi_reduction <add>, %85, %cst_59 [1] : vector<2x6x16xf32> to vector<2x16xf32>
    %c0_60 = arith.constant 0 : index
    %c0_61 = arith.constant 0 : index
    %87 = vector.load %arg23[%c0_60, %c0_61] : memref<16x128xf32, #tpu.memory_space<vmem>>, vector<16x128xf32>
    %cst_62 = arith.constant dense<0.000000e+00> : vector<2x128xf32>
    %88 = tpu.matmul %0, %87, %cst_62 {dimension_numbers = #tpu.dot_dimension_numbers<[1], [0], [0], [1], [0, 0, 1, 1], [], []>} : vector<2x16xf32>, vector<16x128xf32>, vector<2x128xf32> -> vector<2x128xf32>
    %c0_63 = arith.constant 0 : index
    %c0_64 = arith.constant 0 : index
    %89 = vector.load %arg24[%c0_63, %c0_64] : memref<32x128xf32, #tpu.memory_space<vmem>>, vector<32x128xf32>
    %cst_65 = arith.constant dense<0.000000e+00> : vector<2x128xf32>
    %90 = tpu.matmul %47, %89, %cst_65 {dimension_numbers = #tpu.dot_dimension_numbers<[1], [0], [0], [1], [0, 0, 1, 1], [], []>} : vector<2x32xf32>, vector<32x128xf32>, vector<2x128xf32> -> vector<2x128xf32>
    %91 = arith.addf %88, %90 : vector<2x128xf32>
    %c0_66 = arith.constant 0 : index
    %c0_67 = arith.constant 0 : index
    %92 = vector.load %arg25[%c0_66, %c0_67] : memref<16x128xf32, #tpu.memory_space<vmem>>, vector<16x128xf32>
    %cst_68 = arith.constant dense<0.000000e+00> : vector<2x128xf32>
    %93 = tpu.matmul %86, %92, %cst_68 {dimension_numbers = #tpu.dot_dimension_numbers<[1], [0], [0], [1], [0, 0, 1, 1], [], []>} : vector<2x16xf32>, vector<16x128xf32>, vector<2x128xf32> -> vector<2x128xf32>
    %94 = arith.addf %91, %93 : vector<2x128xf32>
    %c0_69 = arith.constant 0 : index
    %c0_70 = arith.constant 0 : index
    %c0_71 = arith.constant 0 : index
    %95 = vector.load %arg5[%c0_69, %c0_70, %c0_71] : memref<2x2x32xf32, #tpu.memory_space<vmem>>, vector<1x2x32xf32>
    %96 = vector.shape_cast %95 : vector<1x2x32xf32> to vector<2x32xf32>
    %c0_72 = arith.constant 0 : index
    %c0_73 = arith.constant 0 : index
    %97 = vector.load %arg26[%c0_72, %c0_73] : memref<32x128xf32, #tpu.memory_space<vmem>>, vector<32x128xf32>
    %cst_74 = arith.constant dense<0.000000e+00> : vector<2x128xf32>
    %98 = tpu.matmul %96, %97, %cst_74 {dimension_numbers = #tpu.dot_dimension_numbers<[1], [0], [0], [1], [0, 0, 1, 1], [], []>} : vector<2x32xf32>, vector<32x128xf32>, vector<2x128xf32> -> vector<2x128xf32>
    %99 = arith.addf %94, %98 : vector<2x128xf32>
    %c0_75 = arith.constant 0 : index
    %c0_76 = arith.constant 0 : index
    %100 = vector.load %arg27[%c0_75, %c0_76] : memref<1x128xf32, #tpu.memory_space<vmem>>, vector<1x128xf32>
    %101 = vector.broadcast %100 : vector<1x128xf32> to vector<2x128xf32>
    %102 = arith.addf %99, %101 : vector<2x128xf32>
    %c0_77 = arith.constant 0 : index
    %c0_78 = arith.constant 0 : index
    %c0_79 = arith.constant 0 : index
    %103 = vector.load %arg6[%c0_77, %c0_78, %c0_79] : memref<2x2x32xf32, #tpu.memory_space<vmem>>, vector<1x2x32xf32>
    %104 = vector.shape_cast %103 : vector<1x2x32xf32> to vector<2x32xf32>
    %105 = vector.extract_strided_slice %102 {offsets = [0, 0], sizes = [2, 32], strides = [1, 1]} : vector<2x128xf32> to vector<2x32xf32>
    %106 = arith.negf %105 : vector<2x32xf32>
    %107 = math.exp %106 : vector<2x32xf32>
    %cst_80 = arith.constant 1.000000e+00 : f32
    %108 = vector.broadcast %cst_80 : f32 to vector<2x32xf32>
    %109 = arith.addf %108, %107 : vector<2x32xf32>
    %110 = arith.divf %108, %109 : vector<2x32xf32>
    %111 = vector.extract_strided_slice %102 {offsets = [0, 32], sizes = [2, 32], strides = [1, 1]} : vector<2x128xf32> to vector<2x32xf32>
    %112 = arith.negf %111 : vector<2x32xf32>
    %113 = math.exp %112 : vector<2x32xf32>
    %cst_81 = arith.constant 1.000000e+00 : f32
    %114 = vector.broadcast %cst_81 : f32 to vector<2x32xf32>
    %115 = arith.addf %114, %113 : vector<2x32xf32>
    %116 = arith.divf %114, %115 : vector<2x32xf32>
    %117 = vector.extract_strided_slice %102 {offsets = [0, 64], sizes = [2, 32], strides = [1, 1]} : vector<2x128xf32> to vector<2x32xf32>
    %118 = math.tanh %117 : vector<2x32xf32>
    %119 = vector.extract_strided_slice %102 {offsets = [0, 96], sizes = [2, 32], strides = [1, 1]} : vector<2x128xf32> to vector<2x32xf32>
    %120 = arith.negf %119 : vector<2x32xf32>
    %121 = math.exp %120 : vector<2x32xf32>
    %cst_82 = arith.constant 1.000000e+00 : f32
    %122 = vector.broadcast %cst_82 : f32 to vector<2x32xf32>
    %123 = arith.addf %122, %121 : vector<2x32xf32>
    %124 = arith.divf %122, %123 : vector<2x32xf32>
    %125 = arith.mulf %116, %104 : vector<2x32xf32>
    %126 = arith.mulf %110, %118 : vector<2x32xf32>
    %127 = arith.addf %125, %126 : vector<2x32xf32>
    %128 = math.tanh %127 : vector<2x32xf32>
    %129 = arith.mulf %124, %128 : vector<2x32xf32>
    %c0_83 = arith.constant 0 : index
    %c0_84 = arith.constant 0 : index
    %c0_85 = arith.constant 0 : index
    %130 = vector.load %arg28[%c0_83, %c0_84, %c0_85] : memref<1x32x128xf32, #tpu.memory_space<vmem>>, vector<1x32x128xf32>
    %131 = vector.shape_cast %130 : vector<1x32x128xf32> to vector<32x128xf32>
    %cst_86 = arith.constant dense<0.000000e+00> : vector<2x128xf32>
    %132 = tpu.matmul %129, %131, %cst_86 {dimension_numbers = #tpu.dot_dimension_numbers<[1], [0], [0], [1], [0, 0, 1, 1], [], []>} : vector<2x32xf32>, vector<32x128xf32>, vector<2x128xf32> -> vector<2x128xf32>
    %c1 = arith.constant 1 : index
    %c0_87 = arith.constant 0 : index
    %c0_88 = arith.constant 0 : index
    %133 = vector.load %arg5[%c1, %c0_87, %c0_88] : memref<2x2x32xf32, #tpu.memory_space<vmem>>, vector<1x2x32xf32>
    %134 = vector.shape_cast %133 : vector<1x2x32xf32> to vector<2x32xf32>
    %c0_89 = arith.constant 0 : index
    %c0_90 = arith.constant 0 : index
    %c0_91 = arith.constant 0 : index
    %135 = vector.load %arg29[%c0_89, %c0_90, %c0_91] : memref<1x32x128xf32, #tpu.memory_space<vmem>>, vector<1x32x128xf32>
    %136 = vector.shape_cast %135 : vector<1x32x128xf32> to vector<32x128xf32>
    %cst_92 = arith.constant dense<0.000000e+00> : vector<2x128xf32>
    %137 = tpu.matmul %134, %136, %cst_92 {dimension_numbers = #tpu.dot_dimension_numbers<[1], [0], [0], [1], [0, 0, 1, 1], [], []>} : vector<2x32xf32>, vector<32x128xf32>, vector<2x128xf32> -> vector<2x128xf32>
    %138 = arith.addf %132, %137 : vector<2x128xf32>
    %c0_93 = arith.constant 0 : index
    %c0_94 = arith.constant 0 : index
    %c0_95 = arith.constant 0 : index
    %139 = vector.load %arg30[%c0_93, %c0_94, %c0_95] : memref<1x1x128xf32, #tpu.memory_space<vmem>>, vector<1x1x128xf32>
    %140 = vector.shape_cast %139 : vector<1x1x128xf32> to vector<1x128xf32>
    %141 = vector.broadcast %140 : vector<1x128xf32> to vector<2x128xf32>
    %142 = arith.addf %138, %141 : vector<2x128xf32>
    %c1_96 = arith.constant 1 : index
    %c0_97 = arith.constant 0 : index
    %c0_98 = arith.constant 0 : index
    %143 = vector.load %arg6[%c1_96, %c0_97, %c0_98] : memref<2x2x32xf32, #tpu.memory_space<vmem>>, vector<1x2x32xf32>
    %144 = vector.shape_cast %143 : vector<1x2x32xf32> to vector<2x32xf32>
    %145 = vector.extract_strided_slice %142 {offsets = [0, 0], sizes = [2, 32], strides = [1, 1]} : vector<2x128xf32> to vector<2x32xf32>
    %146 = arith.negf %145 : vector<2x32xf32>
    %147 = math.exp %146 : vector<2x32xf32>
    %cst_99 = arith.constant 1.000000e+00 : f32
    %148 = vector.broadcast %cst_99 : f32 to vector<2x32xf32>
    %149 = arith.addf %148, %147 : vector<2x32xf32>
    %150 = arith.divf %148, %149 : vector<2x32xf32>
    %151 = vector.extract_strided_slice %142 {offsets = [0, 32], sizes = [2, 32], strides = [1, 1]} : vector<2x128xf32> to vector<2x32xf32>
    %152 = arith.negf %151 : vector<2x32xf32>
    %153 = math.exp %152 : vector<2x32xf32>
    %cst_100 = arith.constant 1.000000e+00 : f32
    %154 = vector.broadcast %cst_100 : f32 to vector<2x32xf32>
    %155 = arith.addf %154, %153 : vector<2x32xf32>
    %156 = arith.divf %154, %155 : vector<2x32xf32>
    %157 = vector.extract_strided_slice %142 {offsets = [0, 64], sizes = [2, 32], strides = [1, 1]} : vector<2x128xf32> to vector<2x32xf32>
    %158 = math.tanh %157 : vector<2x32xf32>
    %159 = vector.extract_strided_slice %142 {offsets = [0, 96], sizes = [2, 32], strides = [1, 1]} : vector<2x128xf32> to vector<2x32xf32>
    %160 = arith.negf %159 : vector<2x32xf32>
    %161 = math.exp %160 : vector<2x32xf32>
    %cst_101 = arith.constant 1.000000e+00 : f32
    %162 = vector.broadcast %cst_101 : f32 to vector<2x32xf32>
    %163 = arith.addf %162, %161 : vector<2x32xf32>
    %164 = arith.divf %162, %163 : vector<2x32xf32>
    %165 = arith.mulf %156, %144 : vector<2x32xf32>
    %166 = arith.mulf %150, %158 : vector<2x32xf32>
    %167 = arith.addf %165, %166 : vector<2x32xf32>
    %168 = math.tanh %167 : vector<2x32xf32>
    %169 = arith.mulf %164, %168 : vector<2x32xf32>
    %170 = tpu.concatenate %129, %127, %169, %167 in 1 : vector<2x32xf32>, vector<2x32xf32>, vector<2x32xf32>, vector<2x32xf32> -> vector<2x128xf32>
    %c0_102 = arith.constant 0 : index
    %c0_103 = arith.constant 0 : index
    %171 = vector.load %arg31[%c0_102, %c0_103] : memref<2x128xf32, #tpu.memory_space<vmem>>, vector<2x128xf32>
    tpu.vector_store %arg31[%c0_102, %c0_103], %170 {strides = array<i32>} : memref<2x128xf32, #tpu.memory_space<vmem>>, vector<2x128xf32>,
    return
  }
}

</mosaic_0001>

<bundles_post_ra>
// kernel: lstm_controller_forward.1
= control target key start
LH: loop header
LB: loop body
LE: loop exit
PB: predicated region body
PF: predicated region fallthrough
CT: control target
= control target key end

     0   :  { %v2739_v0 = vmov 0.0|0.0   ;;  %s2740_s3 = smov 7   ;;  %vm2741_vm0 = vmmov 0   ;;  %v2742_v1 = vmov 0.0   ;;  %s2743_s10 = smov 9   ;;  %vm216_vm1 = vcmask 130048   ;;  %s3050_s0 = inlined_call_operand.smem [shape: u32[32], index: -1, kind: input, shape index: {}] }
   0x1   :  { %2584 = vmatprep.subr.bf16.mxu0 %v2739_v0  ;;  %s2329_s6 = sld [smem:[%s3050_s0 + %s2740_s3]]   ;;  %2460 = vmatprep.mubr.msk.f32.mxu0 %vm2741_vm0, %v2742_v1  ;;  %s2744_s14 = smov 1   ;;  %v143_v17 = vlaneseq  ;;  %v2747_v18 = vmov 1966171168   ;;  %vm510_vm2 = vcmask 261120   ;;  %v2749_v41 = vmov 1983009808  }
   0x2   :  { %s1_s9 = sld [smem:[%s3050_s0]]   ;;  %s2745_s18 = smov 19   ;;  %v477_v19 = vunpack.c.l.s4 %v2747_v18  ;;  %v141_v42 = vunpack.c.l.s4 %v2749_v41  ;;  %vm637_vm3 = vcmask 1043456   ;;  %vm592_vm4 = vcmask 31744  }
   0x3   :  { %s2331_s13 = sld [smem:[%s3050_s0 + %s2743_s10]]   ;;  %s2746_s22 = smov 8   ;;  %v144_v20 = vshrl.u32 %v143_v17, 7  ;;  %vm1770_vm5 = vcmask 1041409   ;;  %vm1589_vm6 = vcmask 1040384   ;;  %vm1374_vm7 = vcmask 5120  }
   0x4   :  { %s2323_s17 = sld [smem:[%s3050_s0 + %s2744_s14]]   ;;  %s2748_s26 = smov 10   ;;  %v478_v21 = vunpack.c.0.s8 %v477_v19  ;;  %v142_v43 = vunpack.c.0.s8 %v141_v42  ;;  %vm1584_vm8 = vcmask 7168   ;;  %vm1747_vm9 = vcmask 128000  }
   0x5   :  { %s2341_s21 = sld [smem:[%s3050_s0 + %s2745_s18]]   ;;  %v2816_v30 = vsub.s32 0, %v144_v20  ;;  %s2750_s30 = smov 3   ;;  %vm2314_vm10 = vcmask 523264   ;;  %vm2316_vm11 = vcmask 785408  }
   0x6   :  { %s2330_s25 = sld [smem:[%s3050_s0 + %s2746_s22]]   ;;  %v2813_v23 = vsub.s32 %v478_v21, %v144_v20  ;;  %v2827_v44 = vsub.s32 %v142_v43, %v144_v20  ;;  %s2751_s4 = smov 15  }
   0x7   :  { %v207_v2 = vld [vmem:[%s2329_s6] sm:$0xff]  ;;  %v208_v3 = vld [vmem:[%s2329_s6 + $0x8] sm:$0xff]  ;;  %s2332_s29 = sld [smem:[%s3050_s0 + %s2748_s26]]   ;;  %s2752_s8 = smov 11  }
   0x8   :  { %v2585_v4 = vpack.c.bf16 %v208_v3, %v207_v2  ;;  %v2798_v9 = vld [vmem:[%s1_s9] sm:$0x3]  ;;  %s2325_s3 = sld [smem:[%s3050_s0 + %s2750_s30]]   ;;  %s2753_s12 = smov 2  }
   0x9   :  { %v290_v5 = vld [vmem:[%s2331_s13] sm:$0xff]  ;;  %v291_v6 = vld [vmem:[%s2331_s13 + $0x8] sm:$0xff]  ;;  %s2337_s7 = sld [smem:[%s3050_s0 + %s2751_s4]]   ;;  %s2754_s16 = smov 20  }
   0xa   :  { %v2587_v7 = vpack.c.bf16 %v291_v6, %v290_v5  ;;  %v131_v8 = vld [vmem:[%s2323_s17] sm:$0xff]  ;;  %2586 = vmatpush3.bf16.msra.mxu0 %v2585_v4  ;;  %v132_v10 = vld [vmem:[%s2323_s17 + $0x8] sm:$0xff]  ;;  %s2333_s11 = sld [smem:[%s3050_s0 + %s2752_s8]]   ;;  %s2755_s20 = smov 13  }
   0xb   :  { %2467 = vmatprep.mubr.msk.f32.mxu1 %vm216_vm1, %v131_v8  ;;  %v470_v11 = vld [vmem:[%s2341_s21] sm:$0xff]  ;;  %v471_v12 = vld [vmem:[%s2341_s21 + $0x8] sm:$0xff]  ;;  %v472_v14 = vld [vmem:[%s2341_s21 + $0x10] sm:$0xff]  ;;  %s2324_s15 = sld [smem:[%s3050_s0 + %s2753_s12]]   ;;  %s2756_s24 = smov 16  }
   0xc   :  { %2588 = vmatprep.subr.bf16.mxu1 %v2587_v7  ;;  %v2595_v13 = vpack.c.bf16 %v471_v12, %v470_v11  ;;  %v473_v15 = vld [vmem:[%s2341_s21 + $0x18] sm:$0xff]  ;;  %v2354_v22 = vld [vmem:[%s2330_s25] ss:$0 sm:$0xff]  ;;  %s2342_s19 = sld [smem:[%s3050_s0 + %s2754_s16]]   ;;  %s2757_s28 = smov 21  }
   0xd   :  { %2590 = vmatpush3.bf16.msra.mxu1 %v2587_v7  ;;  %2461 = vmatmul.mubr.msk.f32.vlgmr.msra.gmra.mrb[0].mxu0 %vm216_vm1, %v2798_v9  ;;  %v2599_v16 = vpack.c.bf16 %v473_v15, %v472_v14  ;;  %v2356_v28 = vld [vmem:[%s2332_s29] ss:$0 sm:$0xff]  ;;  %s2335_s23 = sld [smem:[%s3050_s0 + %s2755_s20]]   ;;  %s2758_s2 = smov 12  }
   0xe   :  { %2596 = vmatprep.subr.bf16.mxu1 %v2595_v13  ;;  %v135_v45 = vld [vmem:[%s2325_s3] sm:$0x3f]  ;;  %v136_v48 = vld [vmem:[%s2325_s3 + $0x8] sm:$0x3f]  ;;  %s2338_s27 = sld [smem:[%s3050_s0 + %s2756_s24]]   ;;  %s2759_s6 = smov 14  }
   0xf   :  { %v139_v46 = vcombine.high %v135_v45, %v135_v45  ;;  %v146_v47 = vrot.slane %v135_v45, %v2827_v44  ;;  %v155_v51 = vcombine.high %v136_v48, %v136_v48  ;;  %v162_v52 = vrot.slane %v136_v48, %v2827_v44  ;;  %v811_v53 = vld [vmem:[%s2337_s7] sm:$0xff]  ;;  %v812_v54 = vld [vmem:[%s2337_s7 + $0x8] sm:$0xff]  ;;  %s2343_s1 = sld [smem:[%s3050_s0 + %s2757_s28]]   ;;  %s2760_s10 = smov 24  }
  0x10   :  { %2468 = vmatmul.mubr.msk.f32.vlgmr.msra.gmra.mrb[0].mxu1 %vm216_vm1, %v132_v10  ;;  %v2606_v59 = vpack.c.bf16 %v812_v54, %v811_v53  ;;  %v380_v60 = vld [vmem:[%s2333_s11] sm:$0xff]  ;;  %v381_v61 = vld [vmem:[%s2333_s11 + $0x8] sm:$0xff]  ;;  %s2334_s5 = sld [smem:[%s3050_s0 + %s2758_s2]]   ;;  %s2761_s14 = smov 4  }
  0x11   :  { %2598 = vmatpush3.bf16.msra.mxu1 %v2595_v13  ;;  %v153_v49 = vrot.slane %v139_v46, %v2827_v44  ;;  %v154_v50 = vcombine.high %v146_v47, %v146_v47  ;;  %v170_v55 = vcombine.high %v162_v52, %v162_v52  ;;  %v169_v58 = vrot.slane %v155_v51, %v2827_v44  ;;  %v133_v6 = vld [vmem:[%s2324_s15] sm:$0xff]  ;;  %v134_v7 = vld [vmem:[%s2324_s15 + $0x8] sm:$0xff]  ;;  %s2336_s9 = sld [smem:[%s3050_s0 + %s2759_s6]]   ;;  %s2762_s18 = smov 17  }
  0x12   :  { %2600 = vmatprep.subr.bf16.mxu1 %v2599_v16  ;;  %v2591_v62 = vpack.c.bf16 %v381_v61, %v380_v60  ;;  %v474_v8 = vld [vmem:[%s2342_s19] sm:$0xf]  ;;  %2474 = vmatprep.mubr.msk.f32.mxu0 %vm216_vm1, %v133_v6  ;;  %s2346_s13 = sld [smem:[%s3050_s0 + %s2760_s10]]   ;;  %s2763_s22 = smov 22  }
  0x13   :  { %v820_v56 = vcombine.low %v146_v47, %v154_v50  ;;  %v821_v57 = vcombine.low %v153_v49, %v162_v52  ;;  %v837_v3 = vcombine.low %v170_v55, %v169_v58  ;;  %v732_v49 = vld [vmem:[%s2335_s23] sm:$0xff]  ;;  %v733_v50 = vld [vmem:[%s2335_s23 + $0x8] sm:$0xff]  ;;  %s2326_s17 = sld [smem:[%s3050_s0 + %s2761_s14]]   ;;  %s2764_s26 = smov 23  }
  0x14   :  { %2592 = vmatprep.subr.bf16.mxu0 %v2591_v62  ;;  %v2604_v54 = vpack.c.bf16 %v733_v50, %v732_v49  ;;  %s2339_s21 = sld [smem:[%s3050_s0 + %s2762_s18]]   ;;  %s2765_s30 = smov 26  }
  0x15   :  { %2602 = vmatpush3.bf16.msra.mxu1 %v2599_v16  ;;  %v828_v63 = vrot.slane %v820_v56, %v2827_v44  ;;  %v835_v2 = vrot.slane %v821_v57, %v2827_v44  ;;  %v844_v5 = vrot.slane %v837_v3, %v2827_v44  ;;  %2594 = vmatpush3.bf16.msra.mxu0 %v2591_v62  ;;  %v2369_v56 = vld [vmem:[%s2338_s27] ss:$0 sm:$0xff]  ;;  %s2344_s25 = sld [smem:[%s3050_s0 + %s2763_s22]]   ;;  %s2766_s4 = smov 25  }
  0x16   :  { %2607 = vmatprep.subr.bf16.mxu1 %v2606_v59  ;;  %2488 = vmatprep.subr.msk.mxu0 %vm637_vm3, %v474_v8  ;;  %s2345_s29 = sld [smem:[%s3050_s0 + %s2764_s26]]   ;;  %s2767_s8 = smov 5  }
  0x17   :  { %v836_v4 = vcombine.low %v828_v63, %v835_v2  ;;  %s2348_s3 = sld [smem:[%s3050_s0 + %s2765_s30]]   ;;  %s2768_s12 = smov 18  }
  0x18   :  { %2475 = vmatmul.mubr.msk.f32.vlgmr.msra.gmra.mrb[2].mxu0 %vm216_vm1, %v134_v7  ;;  %s2347_s7 = sld [smem:[%s3050_s0 + %s2766_s4]]   ;;  %s2769_s16 = smov 27  }
  0x19   :  { %2489 = vmatpush3.msk.msra.mxu0 %vm637_vm3, %v474_v8  ;;  %s2981_s11 = sld [smem:[%s3050_s0 + %s2767_s8]]   ;;  %s2770_s20 = smov 6  }
  0x1a   :  { %2603 = vmatprep.subr.bf16.mxu0 %v2739_v0  ;;  %s2340_s15 = sld [smem:[%s3050_s0 + %s2768_s12]]   ;;  %s2771_s24 = smov 64  }
  0x1b   :  { %s2349_s19 = sld [smem:[%s3050_s0 + %s2769_s16]]   ;;  %s2773_s26 = smov 29  }
  0x1c   :  { %s3014_s23 = sld [smem:[%s3050_s0 + %s2770_s20]]   ;;  %s2774_s30 = smov 28  }
  0x1d   :  { %s2775_s4 = smov 30   ;;  %s2776_s8 = smov 96  }
  0xe0   :  { %v286_v24 = vpop.f32.mrb[0].mxu0 }
  0xe1   :  { %v287_v25 = vadd.f32 %v2354_v22, %v286_v24  ;;  %v2462_v26 = vpop.f32.mrb[1].mxu0 }
  0xe3   :  { %v2469_v27 = vpop.f32.mrb[0].mxu1  ;;  %v482_v29 = vrot.slane %v287_v25, %v2813_v23 }
  0xe4   :  { %v371_v31 = vpop.f32.mrb[1].mxu1  ;;  %v377_v37 = vadd.f32 %v2469_v27, %v2356_v28 }
  0xe5   :  { %v483_v32 = vcombine.high %v482_v29, %v482_v29  ;;  %v490_v33 = vrot.slane %v482_v29, %v2813_v23  ;;  %v372_v34 = vadd.f32 %v2356_v28, %v371_v31 }
  0xe7   :  { %v497_v35 = vrot.slane %v483_v32, %v2813_v23  ;;  %v501_v36 = vrot.slane %v490_v33, %v2816_v30 }
  0xe9   :  { %v505_v38 = vrot.slane %v497_v35, %v2816_v30  ;;  %v508_v39 = vmul.f32 %v501_v36, %v372_v34 }
  0xeb   :  { %v509_v40 = vmul.f32 %v505_v38, %v377_v37  ;;  %2485 = vmatprep.mubr.msk.f32.mxu1 %vm510_vm2, %v508_v39 }
  0xed   :  { %2486 = vmatmul.mubr.msk.f32.vlgmr.msra.gmra.mrb[2].mxu1 %vm510_vm2, %v509_v40 }
  0xee   :  { %2609 = vmatpush3.bf16.msra.mxu1 %v2606_v59  ;;  %2504 = vmatprep.mubr.msk.f32.mxu1 %vm216_vm1, %v836_v4  ;;  %v2476_v59 = vpop.f32.mrb[2].mxu0 }
  0xef   :  { %v461_v62 = vpop.f32.mrb[3].mxu0 }
  0xf1   :  { %2505 = vmatmul.mubr.msk.f32.vlgmr.msra.gmra.mrb[4].mxu1 %vm216_vm1, %v844_v5 }
 0x1c0   :  { %v2487_v10 = vpop.f32.mrb[2].mxu1 }
 0x1c1   :  { %v600_v11 = vsel %vm592_vm4, %v2487_v10, -inf  ;;  %v583_v12 = vpop.f32.mrb[3].mxu1 }
 0x1c2   :  { %v601_v13 = vrot.slane %v600_v11, 4  ;;  %v593_v14 = vsel %vm592_vm4, %v583_v12, -inf }
 0x1c3   :  { %v594_v15 = vrot.slane %v593_v14, 4 }
 0x1c4   :  { %v602_v16 = vmax.f32 %v600_v11, %v601_v13  ;;  %v2506_v57 = vpop.f32.mrb[4].mxu1  ;;  %v1097_v11 = vld [vmem:[%s2343_s1] sm:$0xff] }
 0x1c5   :  { %v595_v17 = vmax.f32 %v593_v14, %v594_v15  ;;  %v921_v58 = vadd.f32 %v2506_v57, %v2369_v56  ;;  %v915_v60 = vpop.f32.mrb[5].mxu1  ;;  %v2359_v15 = vld [vmem:[%s2334_s5] ss:$0 sm:$0xff] }
 0x1c6   :  { %v603_v18 = vrot.slane %v602_v16, 2  ;;  %v916_v61 = vadd.f32 %v2369_v56, %v915_v60 }
 0x1c7   :  { %v596_v19 = vrot.slane %v595_v17, 2  ;;  %v949_v63 = vrot.slane %v921_v58, %v2827_v44 }
 0x1c8   :  { %v604_v20 = vmax.f32 %v602_v16, %v603_v18  ;;  %v926_v2 = vcombine.high %v916_v61, %v916_v61  ;;  %v933_v14 = vrot.slane %v916_v61, %v2827_v44  ;;  %v467_v16 = vadd.f32 %v2476_v59, %v2359_v15 }
 0x1c9   :  { %v597_v21 = vmax.f32 %v595_v17, %v596_v19  ;;  %v950_v3 = vcombine.high %v949_v63, %v949_v63  ;;  %v462_v18 = vadd.f32 %v2359_v15, %v461_v62  ;;  %v171_v15 = vld [vmem:[%s2326_s17] sm:$0x3f] }
 0x1ca   :  { %v605_v22 = vrot.slane %v604_v20, 1  ;;  %v940_v4 = vrot.slane %v926_v2, %v2827_v44  ;;  %v941_v17 = vcombine.high %v933_v14, %v933_v14 }
 0x1cb   :  { %v598_v24 = vrot.slane %v597_v21, 1  ;;  %v1163_v6 = vrot.slane %v950_v3, %v2827_v44  ;;  %v1764_v3 = vld [vmem:[%s2346_s13] sm:$0xff] }
 0x1cc   :  { %v606_v25 = vmax.f32 %v604_v20, %v605_v22  ;;  %v942_v5 = vcombine.high %v940_v4, %v940_v4 }
 0x1cd   :  { %v599_v26 = vmax.f32 %v597_v21, %v598_v24  ;;  %v2367_v24 = vld [vmem:[%s2336_s9] ss:$0 sm:$0xff]  ;;  %s2777_s9 = smov 31  }
 0x1ce   :  { %v608_v27 = vsub.f32 %v2487_v10, %v606_v25  ;;  %v1149_v7 = vcombine.low %v942_v5, %v949_v63  ;;  %v1133_v25 = vcombine.low %v933_v14, %v941_v17  ;;  %v951_v17 = vld [vmem:[%s2339_s21] sm:$0xff]  ;;  %s2353_s12 = sld [smem:[%s3050_s0 + %s2777_s9]]  }
 0x1cf   :  { %v607_v28 = vsub.f32 %v583_v12, %v599_v26  ;;  %v1098_v12 = vld [vmem:[%s2343_s1 + $0x8] sm:$0xff] }
 0x1d0   :  { %v611_v29 = vmul.f32 1.442695, %v608_v27  ;;  %v1156_v8 = vrot.slane %v1149_v7, %v2827_v44  ;;  %v2614_v13 = vpack.c.bf16 %v1098_v12, %v1097_v11  ;;  %v1766_v12 = vld [vmem:[%s2346_s13 + $0x10] sm:$0xff] }
 0x1d1   :  { %v609_v31 = vmul.f32 1.442695, %v607_v28 }
 0x1d2   :  { %2691 = vpow2.f32 %v611_v29  ;;  %v1164_v10 = vcombine.low %v1156_v8, %v1163_v6  ;;  %2615 = vmatprep.subr.bf16.mxu1 %v2614_v13 }
 0x1d3   :  { %2693 = vpow2.f32 %v609_v31  ;;  %2617 = vmatpush3.bf16.msra.mxu1 %v2614_v13  ;;  %v1767_v13 = vld [vmem:[%s2346_s13 + $0x18] sm:$0xff] }
 0x1d4   :  { %2618 = vmatprep.subr.bf16.mxu1 %v2739_v0  ;;  %v2622_v14 = vpack.c.bf16 %v1767_v13, %v1766_v12 }
 0x1dc   :  { %v2692_v32 = vpop.eup %2691 }
 0x1dd   :  { %v2694_v33 = vpop.eup %2693  ;;  %v620_v34 = vsel %vm592_vm4, %v2692_v32, 0.0 }
 0x1de   :  { %v621_v35 = vrot.slane %v620_v34, 4  ;;  %v613_v36 = vsel %vm592_vm4, %v2694_v33, 0.0 }
 0x1df   :  { %v614_v37 = vrot.slane %v613_v36, 4 }
 0x1e0   :  { %v622_v38 = vadd.f32 %v621_v35, %v620_v34  ;;  %v1140_v35 = vrot.slane %v1133_v25, %v2827_v44 }
 0x1e1   :  { %v615_v39 = vadd.f32 %v614_v37, %v613_v36  ;;  %v1147_v36 = vrot.slane %v940_v4, %v2827_v44  ;;  %v1765_v4 = vld [vmem:[%s2346_s13 + $0x8] sm:$0xff] }
 0x1e2   :  { %v623_v40 = vrot.slane %v622_v38, 2  ;;  %v2619_v11 = vpack.c.bf16 %v1765_v4, %v1764_v3 }
 0x1e3   :  { %v616_v41 = vrot.slane %v615_v39, 2 }
 0x1e4   :  { %v624_v42 = vadd.f32 %v623_v40, %v622_v38 }
 0x1e5   :  { %v617_v43 = vadd.f32 %v616_v41, %v615_v39 }
 0x1e6   :  { %v625_v45 = vrot.slane %v624_v42, 1 }
 0x1e7   :  { %v618_v46 = vrot.slane %v617_v43, 1 }
 0x1e8   :  { %v626_v47 = vadd.f32 %v625_v45, %v624_v42  ;;  %v1148_v45 = vcombine.low %v1140_v35, %v1147_v36 }
 0x1e9   :  { %v619_v48 = vadd.f32 %v618_v46, %v617_v43 }
 0x1ea   :  { %2695 = vrcp.f32 %v626_v47 }
 0x1eb   :  { %2697 = vrcp.f32 %v619_v48 }
 0x1f4   :  { %v2696_v51 = vpop.eup %2695 }
 0x1f5   :  { %v2698_v52 = vpop.eup %2697  ;;  %v630_v55 = vmul.f32 %v2696_v51, %v2692_v32 }
 0x1f6   :  { %v628_v53 = vmul.f32 %v2698_v52, %v2694_v33 }
 0x1f8   :  { %2490 = vmatprep.mubr.msk.f32.mxu0 %vm592_vm4, %v628_v53 }
 0x1f9   :  { %2491 = vmatmul.mubr.msk.f32.vlgmr.msra.gmra.mrb[4].mxu0 %vm592_vm4, %v630_v55 }
 0x1fa   :  { %2605 = vmatpush3.bf16.msra.mxu0 %v2604_v54  ;;  %2497 = vmatprep.mubr.msk.f32.mxu0 %vm2741_vm0, %v2742_v1 }
 0x1fd   :  { %2498 = vmatmul.mubr.msk.f32.vlgmr.msra.gmra.mrb[6].mxu0 %vm216_vm1, %v2798_v9 }
 0x2cc   :  { %v2492_v19 = vpop.f32.mrb[4].mxu0 }
 0x2cd   :  { %v717_v20 = vmul.f32 %v2492_v19, %v467_v16  ;;  %v707_v21 = vpop.f32.mrb[5].mxu0  ;;  %v172_v16 = vld [vmem:[%s2326_s17 + $0x8] sm:$0x3f]  ;;  %v175_v19 = vcombine.high %v171_v15, %v171_v15 }
 0x2ce   :  { %v716_v22 = vmul.f32 %v707_v21, %v462_v18  ;;  %v952_v18 = vld [vmem:[%s2339_s21 + $0x8] sm:$0xff]  ;;  %v191_v21 = vcombine.high %v172_v16, %v172_v16 }
 0x2cf   :  { %v725_v26 = vsel %vm510_vm2, %v717_v20, 0.0  ;;  %v182_v20 = vrot.slane %v171_v15, %v2827_v44  ;;  %v189_v25 = vrot.slane %v175_v19, %v2827_v44 }
 0x2d0   :  { %v726_v27 = vrot.slane %v725_v26, 4  ;;  %v718_v28 = vsel %vm510_vm2, %v716_v22, 0.0  ;;  %v807_v29 = vpop.f32.mrb[6].mxu0  ;;  %v198_v22 = vrot.slane %v172_v16, %v2827_v44 }
 0x2d1   :  { %v719_v31 = vrot.slane %v718_v28, 4  ;;  %v808_v32 = vadd.f32 %v2367_v24, %v807_v29  ;;  %v2499_v33 = vpop.f32.mrb[7].mxu0  ;;  %v2610_v24 = vpack.c.bf16 %v952_v18, %v951_v17  ;;  %v1099_v29 = vld [vmem:[%s2344_s25] sm:$0x1]  ;;  %s2772_s25 = smov 32  }
 0x2d2   :  { %v727_v34 = vadd.f32 %v726_v27, %v725_v26  ;;  %v190_v26 = vcombine.high %v182_v20, %v182_v20  ;;  %v206_v27 = vcombine.high %v198_v22, %v198_v22 }
 0x2d3   :  { %v720_v37 = vadd.f32 %v719_v31, %v718_v28  ;;  %v1107_v38 = vrot.slane %v808_v32, %v2813_v23  ;;  %v205_v28 = vrot.slane %v191_v21, %v2827_v44  ;;  %2611 = vmatprep.subr.bf16.mxu0 %v2610_v24  ;;  %v961_v32 = vcombine.low %v189_v25, %v198_v22 }
 0x2d4   :  { %v728_v39 = vrot.slane %v727_v34, 2  ;;  %2613 = vmatpush3.bf16.msra.mxu0 %v2610_v24  ;;  %v960_v31 = vcombine.low %v182_v20, %v190_v26 }
 0x2d5   :  { %v721_v40 = vrot.slane %v720_v37, 2  ;;  %v1108_v41 = vcombine.high %v1107_v38, %v1107_v38  ;;  %v1115_v42 = vrot.slane %v1107_v38, %v2813_v23  ;;  %v977_v33 = vcombine.low %v206_v27, %v205_v28  ;;  %2521 = vmatprep.subr.msk.mxu0 %vm1589_vm6, %v1099_v29 }
 0x2d6   :  { %v729_v43 = vadd.f32 %v728_v39, %v727_v34  ;;  %v968_v34 = vrot.slane %v960_v31, %v2827_v44  ;;  %v975_v35 = vrot.slane %v961_v32, %v2827_v44 }
 0x2d7   :  { %v722_v46 = vadd.f32 %v721_v40, %v720_v37  ;;  %v1122_v47 = vrot.slane %v1108_v41, %v2813_v23  ;;  %v1126_v48 = vrot.slane %v1115_v42, %v2816_v30  ;;  %v984_v36 = vrot.slane %v977_v33, %v2827_v44 }
 0x2d8   :  { %v730_v49 = vrot.slane %v729_v43, 1  ;;  %v976_v37 = vcombine.low %v968_v34, %v975_v35 }
 0x2d9   :  { %v723_v50 = vrot.slane %v722_v46, 1  ;;  %v1130_v51 = vrot.slane %v1122_v47, %v2816_v30  ;;  %v1167_v52 = vmul.f32 %v1148_v45, %v1126_v48 }
 0x2da   :  { %v731_v53 = vadd.f32 %v730_v49, %v729_v43  ;;  %2511 = vmatprep.mubr.msk.f32.mxu0 %vm216_vm1, %v976_v37 }
 0x2db   :  { %v724_v54 = vadd.f32 %v723_v50, %v722_v46  ;;  %v1168_v55 = vmul.f32 %v1164_v10, %v1130_v51  ;;  %v1171_v56 = vcombine.high %v1167_v52, %v1167_v52  ;;  %v1178_v57 = vrot.slane %v1167_v52, %v2827_v44  ;;  %2512 = vmatmul.mubr.msk.f32.vlgmr.msra.gmra.mrb[8].mxu0 %vm216_vm1, %v984_v36 }
 0x2dc   :  { %2522 = vmatpush3.msk.msra.mxu0 %vm1589_vm6, %v1099_v29 }
 0x2dd   :  { %v1185_v23 = vrot.slane %v1171_v56, %v2827_v44  ;;  %v1186_v58 = vcombine.high %v1178_v57, %v1178_v57  ;;  %v1187_v59 = vcombine.high %v1168_v55, %v1168_v55  ;;  %v1194_v60 = vrot.slane %v1168_v55, %v2827_v44  ;;  %2624 = vmatprep.subr.bf16.mxu0 %v2739_v0 }
 0x2de   :  { %v1771_v61 = vsel %vm1770_vm5, %v731_v53, %v724_v54 }
 0x2df   :  { %v1201_v62 = vrot.slane %v1187_v59, %v2827_v44  ;;  %v1202_v63 = vcombine.high %v1194_v60, %v1194_v60  ;;  %v1203_v30 = vcombine.low %v1178_v57, %v1186_v58  ;;  %v1204_v2 = vcombine.low %v1185_v23, %v1194_v60 }
 0x2e1   :  { %v1211_v5 = vrot.slane %v1203_v30, %v2827_v44  ;;  %v1218_v6 = vrot.slane %v1204_v2, %v2827_v44  ;;  %v1220_v7 = vcombine.low %v1202_v63, %v1201_v62 }
 0x2e3   :  { %v1219_v8 = vcombine.low %v1211_v5, %v1218_v6  ;;  %v1227_v10 = vrot.slane %v1220_v7, %v2827_v44 }
 0x2e5   :  { %2518 = vmatprep.mubr.msk.f32.mxu1 %vm216_vm1, %v1219_v8 }
 0x2e6   :  { %2519 = vmatmul.mubr.msk.f32.vlgmr.msra.gmra.mrb[6].mxu1 %vm216_vm1, %v1227_v10 }
 0x2e7   :  { %2620 = vmatpush3.bf16.msra.mxu1 %v2619_v11  ;;  %2534 = vmatprep.mubr.msk.f32.mxu1 %vm2741_vm0, %v2742_v1 }
 0x2e8   :  { %2621 = vmatprep.subr.bf16.mxu1 %v2739_v0 }
 0x2eb   :  { %2623 = vmatpush3.bf16.msra.mxu1 %v2622_v14 }
 0x2ec   :  { %2630 = vmatprep.subr.bf16.mxu1 %v2739_v0 }
 0x2ee   :  { %2535 = vmatmul.mubr.msk.f32.vlgmr.msra.gmra.mrb[8].mxu1 %vm510_vm2, %v1771_v61 }
 0x2ef   :  { %2559 = vmatprep.mubr.msk.f32.mxu1 %vm2741_vm0, %v2742_v1 }
 0x3b9   :  { %v2520_v38 = vpop.f32.mrb[6].mxu1 }
 0x3ba   :  { %v1298_v39 = vpop.f32.mrb[7].mxu1  ;;  %v1332_v40 = vrot.slane %v2520_v38, %v2827_v44 }
 0x3bb   :  { %v1309_v41 = vcombine.high %v1298_v39, %v1298_v39  ;;  %v1316_v42 = vrot.slane %v1298_v39, %v2827_v44 }
 0x3bc   :  { %v1333_v46 = vcombine.high %v1332_v40, %v1332_v40 }
 0x3bd   :  { %v1323_v43 = vrot.slane %v1309_v41, %v2827_v44  ;;  %v1324_v45 = vcombine.high %v1316_v42, %v1316_v42 }
 0x3be   :  { %v1370_v54 = vrot.slane %v1333_v46, %v2827_v44 }
 0x3bf   :  { %v1325_v47 = vcombine.high %v1323_v43, %v1323_v43  ;;  %v1340_v48 = vcombine.low %v1316_v42, %v1324_v45  ;;  %v1354_v50 = vrot.slane %v1323_v43, %v2827_v44 }
 0x3c1   :  { %v1347_v49 = vrot.slane %v1340_v48, %v2827_v44  ;;  %v1356_v51 = vcombine.low %v1325_v47, %v1332_v40  ;;  %v2939_v52 = vpop.f32.mrb[8].mxu1 }
 0x3c2   :  { %v2536_v53 = vpop.f32.mrb[9].mxu1 }
 0x3c3   :  { %v1355_v55 = vcombine.low %v1347_v49, %v1354_v50  ;;  %v1363_v56 = vrot.slane %v1356_v51, %v2827_v44 }
 0x3c5   :  { %v1371_v57 = vcombine.low %v1363_v56, %v1370_v54  ;;  %v1375_v23 = vsel %vm1374_vm7, %v1355_v55, -inf }
 0x3c6   :  { %v1376_v58 = vrot.slane %v1375_v23, 4 }
 0x3c7   :  { %v1382_v59 = vsel %vm1374_vm7, %v1371_v57, -inf }
 0x3c8   :  { %v1377_v60 = vmax.f32 %v1375_v23, %v1376_v58  ;;  %v1383_v61 = vrot.slane %v1382_v59, 4 }
 0x3ca   :  { %v1378_v62 = vrot.slane %v1377_v60, 2  ;;  %v1384_v63 = vmax.f32 %v1382_v59, %v1383_v61 }
 0x3cc   :  { %v1379_v30 = vmax.f32 %v1377_v60, %v1378_v62  ;;  %v1385_v2 = vrot.slane %v1384_v63, 2 }
 0x3ce   :  { %v1380_v3 = vrot.slane %v1379_v30, 1  ;;  %v1386_v4 = vmax.f32 %v1384_v63, %v1385_v2 }
 0x3d0   :  { %v1381_v5 = vmax.f32 %v1379_v30, %v1380_v3  ;;  %v1387_v6 = vrot.slane %v1386_v4, 1 }
 0x3d2   :  { %v1388_v7 = vmax.f32 %v1386_v4, %v1387_v6  ;;  %v1391_v8 = vcombine.high %v1381_v5, %v1381_v5  ;;  %v1398_v10 = vrot.slane %v1381_v5, %v2827_v44 }
 0x3d4   :  { %v1405_v11 = vrot.slane %v1391_v8, %v2827_v44  ;;  %v1406_v12 = vcombine.high %v1398_v10, %v1398_v10  ;;  %v1407_v13 = vcombine.high %v1388_v7, %v1388_v7  ;;  %v1414_v14 = vrot.slane %v1388_v7, %v2827_v44 }
 0x3d5   :  { %v1429_v15 = vsub.f32 %v1316_v42, %v1398_v10 }
 0x3d6   :  { %v1421_v16 = vrot.slane %v1407_v13, %v2827_v44  ;;  %v1422_v17 = vcombine.high %v1414_v14, %v1414_v14  ;;  %v1430_v18 = vsub.f32 %v1324_v45, %v1406_v12  ;;  %v1431_v19 = vsub.f32 %v1323_v43, %v1405_v11 }
 0x3d7   :  { %v1432_v20 = vsub.f32 %v1325_v47, %v1414_v14  ;;  %v1435_v21 = vmul.f32 1.442695, %v1429_v15 }
 0x3d8   :  { %v1433_v22 = vsub.f32 %v1332_v40, %v1422_v17  ;;  %v1434_v24 = vsub.f32 %v1333_v46, %v1421_v16  ;;  %v1437_v25 = vmul.f32 1.442695, %v1430_v18  ;;  %v1439_v26 = vmul.f32 1.442695, %v1431_v19 }
 0x3d9   :  { %2699 = vpow2.f32 %v1435_v21  ;;  %v1441_v27 = vmul.f32 1.442695, %v1432_v20  ;;  %v1762_v21 = vld [vmem:[%s2345_s29] sm:$0xff] }
 0x3da   :  { %2701 = vpow2.f32 %v1437_v25  ;;  %v1443_v28 = vmul.f32 1.442695, %v1433_v22  ;;  %v1445_v29 = vmul.f32 1.442695, %v1434_v24  ;;  %v1763_v22 = vld [vmem:[%s2345_s29 + $0x8] sm:$0xff]  ;;  %s2351_s29 = sld [smem:[%s3050_s0 + %s2773_s26]]  }
 0x3db   :  { %2703 = vpow2.f32 %v1439_v26 }
 0x3dc   :  { %2705 = vpow2.f32 %v1441_v27 }
 0x3dd   :  { %2707 = vpow2.f32 %v1443_v28  ;;  %v2625_v28 = vpack.c.bf16 %v1763_v22, %v1762_v21 }
 0x3de   :  { %2709 = vpow2.f32 %v1445_v29  ;;  %v2513_v29 = vpop.f32.mrb[8].mxu0 }
 0x3e3   :  { %v2700_v31 = vpop.eup %2699 }
 0x3e4   :  { %v2702_v32 = vpop.eup %2701 }
 0x3e5   :  { %v2704_v33 = vpop.eup %2703  ;;  %v1453_v34 = vcombine.low %v2700_v31, %v2702_v32 }
 0x3e6   :  { %v2706_v35 = vpop.eup %2705  ;;  %v1467_v38 = vrot.slane %v2704_v33, %v2827_v44 }
 0x3e7   :  { %v2708_v36 = vpop.eup %2707  ;;  %v1460_v37 = vrot.slane %v1453_v34, %v2827_v44  ;;  %v1995_v34 = vld [vmem:[%s2348_s3 + $0x10] sm:$0xff] }
 0x3e8   :  { %v2710_v39 = vpop.eup %2709  ;;  %v1469_v40 = vcombine.low %v2706_v35, %v2708_v36 }
 0x3e9   :  { %v1468_v41 = vcombine.low %v1460_v37, %v1467_v38  ;;  %v1483_v43 = vrot.slane %v2710_v39, %v2827_v44  ;;  %v1915_v37 = vld [vmem:[%s2347_s7 + $0x8] sm:$0xff] }
 0x3ea   :  { %v1476_v42 = vrot.slane %v1469_v40, %v2827_v44  ;;  %v1992_v40 = vld [vmem:[%s2981_s11] sm:$0x3] }
 0x3eb   :  { %v1487_v45 = vsel %vm1374_vm7, %v1468_v41, 0.0  ;;  %v2372_v41 = vld [vmem:[%s2340_s15] ss:$0 sm:$0xff] }
 0x3ec   :  { %v1484_v46 = vcombine.low %v1476_v42, %v1483_v43  ;;  %v1488_v47 = vrot.slane %v1487_v45, 4  ;;  %v1061_v43 = vadd.f32 %v2513_v29, %v2372_v41 }
 0x3ee   :  { %v1489_v48 = vadd.f32 %v1488_v47, %v1487_v45  ;;  %v1494_v49 = vsel %vm1374_vm7, %v1484_v46, 0.0  ;;  %v1089_v46 = vrot.slane %v1061_v43, %v2827_v44 }
 0x3ef   :  { %v1495_v50 = vrot.slane %v1494_v49, 4 }
 0x3f0   :  { %v1490_v51 = vrot.slane %v1489_v48, 2 }
 0x3f1   :  { %v1496_v53 = vadd.f32 %v1495_v50, %v1494_v49 }
 0x3f2   :  { %v1491_v54 = vadd.f32 %v1490_v51, %v1489_v48 }
 0x3f3   :  { %v1497_v55 = vrot.slane %v1496_v53, 2 }
 0x3f4   :  { %v1492_v56 = vrot.slane %v1491_v54, 1 }
 0x3f5   :  { %v1498_v57 = vadd.f32 %v1497_v55, %v1496_v53  ;;  %v1090_v55 = vcombine.high %v1089_v46, %v1089_v46 }
 0x3f6   :  { %v1493_v23 = vadd.f32 %v1492_v56, %v1491_v54 }
 0x3f7   :  { %v1499_v58 = vrot.slane %v1498_v57, 1 }
 0x3f8   :  { %v1503_v59 = vcombine.high %v1493_v23, %v1493_v23  ;;  %v1510_v60 = vrot.slane %v1493_v23, %v2827_v44 }
 0x3f9   :  { %v1500_v61 = vadd.f32 %v1499_v58, %v1498_v57 }
 0x3fa   :  { %v1517_v62 = vrot.slane %v1503_v59, %v2827_v44  ;;  %v1518_v63 = vcombine.high %v1510_v60, %v1510_v60  ;;  %2711 = vrcp.f32 %v1510_v60 }
 0x3fb   :  { %v1519_v30 = vcombine.high %v1500_v61, %v1500_v61  ;;  %v1526_v2 = vrot.slane %v1500_v61, %v2827_v44 }
 0x3fc   :  { %2713 = vrcp.f32 %v1518_v63 }
 0x3fd   :  { %2715 = vrcp.f32 %v1517_v62  ;;  %v1533_v3 = vrot.slane %v1519_v30, %v2827_v44  ;;  %v1534_v4 = vcombine.high %v1526_v2, %v1526_v2 }
 0x3fe   :  { %2717 = vrcp.f32 %v1526_v2 }
 0x3ff   :  { %2719 = vrcp.f32 %v1534_v4 }
 0x400   :  { %2721 = vrcp.f32 %v1533_v3 }
 0x404   :  { %v2712_v5 = vpop.eup %2711 }
 0x405   :  { %v1542_v8 = vmul.f32 %v2712_v5, %v2700_v31  ;;  %v1055_v31 = vpop.f32.mrb[9].mxu0 }
 0x406   :  { %v2714_v6 = vpop.eup %2713  ;;  %v1056_v42 = vadd.f32 %v2372_v41, %v1055_v31 }
 0x407   :  { %v2716_v7 = vpop.eup %2715  ;;  %v1544_v10 = vmul.f32 %v2714_v6, %v2702_v32  ;;  %v1993_v32 = vld [vmem:[%s2348_s3] sm:$0xff] }
 0x408   :  { %v2718_v11 = vpop.eup %2717  ;;  %v1546_v12 = vmul.f32 %v2716_v7, %v2704_v33  ;;  %v1994_v33 = vld [vmem:[%s2348_s3 + $0x8] sm:$0xff]  ;;  %v1066_v45 = vcombine.high %v1056_v42, %v1056_v42  ;;  %v1073_v47 = vrot.slane %v1056_v42, %v2827_v44 }
 0x409   :  { %v2720_v13 = vpop.eup %2719  ;;  %v1548_v14 = vmul.f32 %v2718_v11, %v2706_v35  ;;  %v1559_v15 = vcombine.low %v1542_v8, %v1544_v10  ;;  %v2631_v35 = vpack.c.bf16 %v1994_v33, %v1993_v32 }
 0x40a   :  { %v2722_v16 = vpop.eup %2721  ;;  %v1550_v17 = vmul.f32 %v2720_v13, %v2708_v36  ;;  %v1914_v36 = vld [vmem:[%s2347_s7] sm:$0xff]  ;;  %v1080_v51 = vrot.slane %v1066_v45, %v2827_v44  ;;  %v1081_v23 = vcombine.high %v1073_v47, %v1073_v47  ;;  %s2352_s7 = sld [smem:[%s3050_s0 + %s2775_s4]]  }
 0x40b   :  { %v1560_v18 = vcombine.low %v1546_v12, %v1548_v14  ;;  %v1567_v19 = vrot.slane %v1559_v15, %v2827_v44  ;;  %v1552_v20 = vmul.f32 %v2722_v16, %v2710_v39  ;;  %2632 = vmatpush3.bf16.msra.mxu1 %v2631_v35  ;;  %v2628_v39 = vpack.c.bf16 %v1915_v37, %v1914_v36 }
 0x40c   :  { %2633 = vmatprep.subr.bf16.mxu1 %v2739_v0  ;;  %v1082_v2 = vcombine.high %v1080_v51, %v1080_v51 }
 0x40d   :  { %v1574_v24 = vrot.slane %v1560_v18, %v2827_v44  ;;  %v1576_v25 = vcombine.low %v1550_v17, %v1552_v20 }
 0x40f   :  { %v1575_v26 = vcombine.low %v1567_v19, %v1574_v24  ;;  %v1583_v27 = vrot.slane %v1576_v25, %v2827_v44 }
 0x411   :  { %2523 = vmatprep.mubr.msk.f32.mxu0 %vm1584_vm8, %v1575_v26 }
 0x412   :  { %2524 = vmatmul.mubr.msk.f32.vlgmr.msra.gmra.mrb[10].mxu0 %vm1584_vm8, %v1583_v27 }
 0x413   :  { %2626 = vmatpush3.bf16.msra.mxu0 %v2625_v28  ;;  %2541 = vmatprep.mubr.msk.f32.mxu0 %vm2741_vm0, %v2742_v1 }
 0x414   :  { %2627 = vmatprep.subr.bf16.mxu0 %v2739_v0 }
 0x416   :  { %2542 = vmatmul.mubr.msk.f32.vlgmr.msra.gmra.mrb[12].mxu0 %vm216_vm1, %v2798_v9  ;;  %v1996_v9 = vld [vmem:[%s2348_s3 + $0x18] sm:$0xff]  ;;  %s2350_s3 = sld [smem:[%s3050_s0 + %s2774_s30]]  }
 0x417   :  { %2548 = vmatprep.mubr.msk.f32.mxu0 %vm2741_vm0, %v2742_v1  ;;  %v2634_v38 = vpack.c.bf16 %v1996_v9, %v1995_v34  ;;  %2629 = vmatpush3.bf16.msra.mxu0 %v2628_v39  ;;  %v2384_v9 = vld [vmem:[%s2349_s19] ss:$0 sm:$0xff] }
 0x418   :  { %2636 = vmatprep.subr.bf16.mxu0 %v2739_v0 }
 0x419   :  { %2635 = vmatpush3.bf16.msra.mxu1 %v2634_v38  ;;  %v2079_v38 = vld [vmem:[%s3014_s23] sm:$0x3] }
 0x41a   :  { %2642 = vmatprep.subr.bf16.mxu1 %v2739_v0 }
 0x41c   :  { %2560 = vmatmul.mubr.msk.f32.vlgmr.msra.gmra.mrb[10].mxu1 %vm510_vm2, %v1992_v40 }
 0x41d   :  { %2581 = vmatprep.mubr.msk.f32.mxu1 %vm2741_vm0, %v2742_v1 }
 0x4e5   :  { %v2525_v48 = vpop.f32.mrb[10].mxu0 }
 0x4e6   :  { %v1693_v49 = vrot.slane %v2525_v48, %v2827_v44  ;;  %v1659_v50 = vpop.f32.mrb[11].mxu0 }
 0x4e7   :  { %v1670_v53 = vcombine.high %v1659_v50, %v1659_v50  ;;  %v1677_v54 = vrot.slane %v1659_v50, %v2827_v44  ;;  %v2114_v50 = vld [vmem:[%s2351_s29] sm:$0xff] }
 0x4e8   :  { %v1694_v56 = vcombine.high %v1693_v49, %v1693_v49  ;;  %v1705_v57 = vmul.f32 %v1693_v49, %v1089_v46 }
 0x4e9   :  { %v1684_v58 = vrot.slane %v1670_v53, %v2827_v44  ;;  %v1685_v59 = vcombine.high %v1677_v54, %v1677_v54  ;;  %v1701_v60 = vmul.f32 %v1677_v54, %v1073_v47  ;;  %v1910_v61 = vpop.f32.mrb[12].mxu0  ;;  %v2108_v53 = vld [vmem:[%s2350_s3] sm:$0xff] }
 0x4ea   :  { %v1706_v62 = vmul.f32 %v1694_v56, %v1090_v55  ;;  %v1911_v63 = vadd.f32 %v1910_v61, %v2939_v52  ;;  %v2543_v30 = vpop.f32.mrb[13].mxu0  ;;  %v2109_v55 = vld [vmem:[%s2350_s3 + $0x8] sm:$0xff]  ;;  %v2116_v56 = vld [vmem:[%s2351_s29 + $0x10] sm:$0xff] }
 0x4eb   :  { %v1686_v3 = vcombine.high %v1684_v58, %v1684_v58  ;;  %v1702_v4 = vmul.f32 %v1685_v59, %v1081_v23  ;;  %v1703_v5 = vmul.f32 %v1684_v58, %v1080_v51  ;;  %v2115_v51 = vld [vmem:[%s2351_s29 + $0x8] sm:$0xff]  ;;  %v2643_v23 = vpack.c.bf16 %v2109_v55, %v2108_v53  ;;  %v2110_v58 = vld [vmem:[%s2350_s3 + $0x10] sm:$0xff]  ;;  %v2111_v59 = vld [vmem:[%s2350_s3 + $0x18] sm:$0xff] }
 0x4ec   :  { %v1743_v12 = vrot.slane %v1706_v62, %v2827_v44  ;;  %v2637_v54 = vpack.c.bf16 %v2115_v51, %v2114_v50  ;;  %v2646_v62 = vpack.c.bf16 %v2111_v59, %v2110_v58 }
 0x4ed   :  { %v1704_v6 = vmul.f32 %v1686_v3, %v1082_v2  ;;  %v1713_v7 = vcombine.low %v1701_v60, %v1702_v4  ;;  %v1727_v10 = vrot.slane %v1703_v5, %v2827_v44  ;;  %2644 = vmatpush3.bf16.msra.mxu1 %v2643_v23  ;;  %v2390_v3 = vld [vmem:[%s3014_s23 + $0x2] sm:$0x3] }
 0x4ee   :  { %2645 = vmatprep.subr.bf16.mxu1 %v2739_v0 }
 0x4ef   :  { %v1720_v8 = vrot.slane %v1713_v7, %v2827_v44  ;;  %v1729_v11 = vcombine.low %v1704_v6, %v1705_v57  ;;  %v2117_v57 = vld [vmem:[%s2351_s29 + $0x18] sm:$0xff]  ;;  %v2389_v7 = vld [vmem:[%s2352_s7] ss:$0 sm:$0xff] }
 0x4f0   :  { %v2640_v61 = vpack.c.bf16 %v2117_v57, %v2116_v56 }
 0x4f1   :  { %v1728_v13 = vcombine.low %v1720_v8, %v1727_v10  ;;  %v1736_v14 = vrot.slane %v1729_v11, %v2827_v44  ;;  %v2066_v44 = vpop.f32.mrb[10].mxu1  ;;  %2647 = vmatpush3.bf16.msra.mxu1 %v2646_v62 }
 0x4f2   :  { %v2561_v32 = vpop.f32.mrb[11].mxu1 }
 0x4f3   :  { %v1744_v15 = vcombine.low %v1736_v14, %v1743_v12  ;;  %v1748_v52 = vsel %vm1747_vm9, %v1728_v13, 0.0 }
 0x4f4   :  { %v1749_v16 = vrot.slane %v1748_v52, 4 }
 0x4f5   :  { %v1755_v17 = vsel %vm1747_vm9, %v1744_v15, 0.0 }
 0x4f6   :  { %v1750_v18 = vadd.f32 %v1749_v16, %v1748_v52  ;;  %v1756_v19 = vrot.slane %v1755_v17, 4 }
 0x4f8   :  { %v1751_v20 = vrot.slane %v1750_v18, 2  ;;  %v1757_v21 = vadd.f32 %v1756_v19, %v1755_v17 }
 0x4fa   :  { %v1752_v22 = vadd.f32 %v1751_v20, %v1750_v18  ;;  %v1758_v24 = vrot.slane %v1757_v21, 2 }
 0x4fc   :  { %v1753_v25 = vrot.slane %v1752_v22, 1  ;;  %v1759_v26 = vadd.f32 %v1758_v24, %v1757_v21 }
 0x4fe   :  { %v1760_v27 = vrot.slane %v1759_v26, 1  ;;  %v1754_v28 = vadd.f32 %v1753_v25, %v1752_v22 }
 0x500   :  { %v1761_v29 = vadd.f32 %v1760_v27, %v1759_v26 }
 0x502   :  { %v1918_v31 = vsel %vm1770_vm5, %v1761_v29, %v1754_v28 }
 0x503   :  { %2549 = vmatmul.mubr.msk.f32.vlgmr.msra.gmra.mrb[14].mxu0 %vm216_vm1, %v1918_v31 }
 0x504   :  { %2570 = vmatprep.mubr.msk.f32.mxu0 %vm2741_vm0, %v2742_v1  ;;  %2638 = vmatpush3.bf16.msra.mxu0 %v2637_v54 }
 0x505   :  { %2639 = vmatprep.subr.bf16.mxu0 %v2739_v0 }
 0x508   :  { %2641 = vmatpush3.bf16.msra.mxu0 %v2640_v61 }
 0x5d6   :  { %v1987_v33 = vpop.f32.mrb[14].mxu0 }
 0x5d7   :  { %v1991_v34 = vadd.f32 %v1987_v33, %v1911_v63  ;;  %v2550_v35 = vpop.f32.mrb[15].mxu0  ;;  %v2386_v63 = vld [vmem:[%s2981_s11 + $0x2] sm:$0x3] }
 0x5d8   :  { %2571 = vmatmul.mubr.msk.f32.vlgmr.msra.gmra.mrb[16].mxu0 %vm510_vm2, %v2386_v63 }
 0x5d9   :  { %v2070_v36 = vadd.f32 %v2066_v44, %v1991_v34 }
 0x5db   :  { %v2078_v37 = vadd.f32 %v2384_v9, %v2070_v36 }
 0x5dd   :  { %2723 = vtanh.f32 %v2078_v37  ;;  %v2385_v39 = vmul.f32 -1.442695, %v2078_v37 }
 0x5df   :  { %2725 = vpow2.f32 %v2385_v39 }
 0x5e7   :  { %v2724_v1 = vpop.eup %2723 }
 0x5e8   :  { %2093 = vrot.lane.b32.xlu0 %v2724_v1, %s2771_s24 }
 0x5e9   :  { %v2726_v40 = vpop.eup %2725 }
 0x5ea   :  { %v2083_v41 = vadd.f32 1.0, %v2726_v40 }
 0x5ec   :  { %2088 = vrot.lane.b32.xlu0 %v2079_v38, %s2772_s25  ;;  %2727 = vrcp.f32 %v2083_v41 }
 0x5f6   :  { %v2728_v42 = vpop.eup %2727 }
 0x65a   :  { %v2094_v43 = vpop.permute.xlu0 %2093 }
 0x65b   :  { %v2096_v45 = vmul.f32 %v2728_v42, %v2094_v43 }
 0x65d   :  { %2098 = vrot.lane.b32.xlu1 %v2096_v45, %s2772_s25 }
 0x65e   :  { %v2089_v46 = vpop.permute.xlu0 %2088 }
 0x65f   :  { %v2091_v47 = vmul.f32 %v2728_v42, %v2089_v46 }
 0x6ab   :  { %v2187_v4 = vpop.f32.mrb[16].mxu0 }
 0x6ac   :  { %v2572_v5 = vpop.f32.mrb[17].mxu0 }
 0x6cf   :  { %v2099_v48 = vpop.permute.xlu1 %2098 }
 0x6d0   :  { %v3020_v49 = vadd.f32 %v2099_v48, %v2091_v47 }
 0x6d2   :  { %2729 = vtanh.f32 %v3020_v49 }
 0x6dc   :  { %v2730_v60 = vpop.eup %2729 }
 0x6dd   :  { %2104 = vrot.lane.b32.xlu1 %v2730_v60, %s2771_s24 }
 0x74f   :  { %v2105_v30 = vpop.permute.xlu1 %2104 }
 0x750   :  { %v2107_v2 = vmul.f32 %v2728_v42, %v2105_v30 }
 0x752   :  { %2192 = vrot.lane.b32.xlu0 %v2107_v2, %s2772_s25 }
 0x756   :  { %2284 = vrot.lane.b32.xlu0 %v2390_v3, %s2772_s25 }
 0x7c4   :  { %v2193_v6 = vpop.permute.xlu0 %2192 }
 0x7c5   :  { %2582 = vmatmul.mubr.msk.f32.vlgmr.msra.gmra.mrb[12].mxu1 %vm510_vm2, %v2193_v6  ;;  %v2313_v26 = vsel %vm510_vm2, %v2193_v6, %v3020_v49 }
 0x7c8   :  { %v2285_v18 = vpop.permute.xlu0 %2284 }
 0x898   :  { %v2262_v0 = vpop.f32.mrb[12].mxu1 }
 0x899   :  { %v2263_v8 = vadd.f32 %v2262_v0, %v2187_v4  ;;  %v2583_v10 = vpop.f32.mrb[13].mxu1 }
 0x89b   :  { %v2273_v11 = vadd.f32 %v2389_v7, %v2263_v8 }
 0x89d   :  { %2731 = vtanh.f32 %v2273_v11  ;;  %v2391_v13 = vmul.f32 -1.442695, %v2273_v11 }
 0x89f   :  { %2733 = vpow2.f32 %v2391_v13 }
 0x8a7   :  { %v2732_v12 = vpop.eup %2731 }
 0x8a8   :  { %2289 = vrot.lane.b32.xlu1 %v2732_v12, %s2771_s24 }
 0x8a9   :  { %v2734_v14 = vpop.eup %2733 }
 0x8aa   :  { %v2279_v15 = vadd.f32 1.0, %v2734_v14 }
 0x8ac   :  { %2735 = vrcp.f32 %v2279_v15 }
 0x8b6   :  { %v2736_v52 = vpop.eup %2735 }
 0x8b7   :  { %v2287_v19 = vmul.f32 %v2736_v52, %v2285_v18 }
 0x91a   :  { %v2290_v16 = vpop.permute.xlu1 %2289 }
 0x91b   :  { %v2292_v17 = vmul.f32 %v2736_v52, %v2290_v16 }
 0x91d   :  { %2294 = vrot.lane.b32.xlu1 %v2292_v17, %s2772_s25 }
 0x98f   :  { %v2295_v20 = vpop.permute.xlu1 %2294 }
 0x990   :  { %v2297_v21 = vadd.f32 %v2295_v20, %v2287_v19 }
 0x992   :  { %2737 = vtanh.f32 %v2297_v21 }
 0x99c   :  { %v2738_v22 = vpop.eup %2737 }
 0x99d   :  { %2300 = vrot.lane.b32.xlu0 %v2738_v22, %s2771_s24 }
 0x9a1   :  { %2310 = vrot.lane.b32.xlu0 %v2297_v21, %s2771_s24 }
 0xa0f   :  { %v2301_v24 = vpop.permute.xlu0 %2300 }
 0xa10   :  { %v2303_v25 = vmul.f32 %v2736_v52, %v2301_v24 }
 0xa12   :  { %2306 = vrot.lane.b32.xlu1 %v2303_v25, %s2776_s8 }
 0xa13   :  { %v2311_v28 = vpop.permute.xlu0 %2310 }
 0xa84   :  { %v2307_v27 = vpop.permute.xlu1 %2306 }
 0xa85   :  { %v2315_v29 = vsel %vm2314_vm10, %v2313_v26, %v2307_v27 }
 0xa86   :  { %v2317_v31 = vsel %vm2316_vm11, %v2315_v29, %v2311_v28 }
 0xa87   :  { %2318 = vst [vmem:[%s2353_s12] sm:$0x3] %v2317_v31 }

</bundles_post_ra>
